<compile_context>
chip_gen: v7x
topology: tpu7x:2x2x1
jax: 0.10.0
libtpu: 0.0.40
codegen_flags: <defaults>
</compile_context>

<pallas_src>
import jax
import jax.numpy as jnp
from jax.experimental import pallas as pl
from jax.experimental.pallas import tpu as pltpu


# ---------------------------------------------------------------------------
# Pallas kernels
# ---------------------------------------------------------------------------
def _linear_kernel(x_ref, w_ref, b_ref, o_ref):
    # y = x @ W^T + b   (W^T pre-transposed to [Cin, Cout])
    y = jnp.dot(x_ref[...], w_ref[...], preferred_element_type=jnp.float32)
    o_ref[...] = (y + b_ref[...]).astype(o_ref.dtype)


def linear(x, w_t, b):
    """Single-block whole-batch linear: [B*N, Cin] @ [Cin, Cout] + b."""
    B, N, Cin = x.shape
    Cout = w_t.shape[1]
    y = pl.pallas_call(
        _linear_kernel,
        out_shape=jax.ShapeDtypeStruct((B * N, Cout), x.dtype),
    )(x.reshape(B * N, Cin), w_t, b.reshape(1, Cout))
    return y.reshape(B, N, Cout)


def _tsn_block_kernel(x_ref, evals_ref, ops_ref, dt_ref,
                      wre_ref, wim_ref,
                      w1a_ref, w1b_ref, w1c_ref, b1_ref,
                      w2_ref, b2_ref, w3_ref, b3_ref,
                      o_ref):
    N = x_ref.shape[1]
    x = x_ref[0]              # [N, C]
    evals = evals_ref[0]      # [K, 1]
    ops = ops_ref[0]          # [4N, K]: rows [0:N]=mass*evecs, [N:2N]=evecs,
                              #          [2N:3N]=gradX@evecs, [3N:4N]=gradY@evecs

    em = ops[:N]              # [N, K]   mass-weighted eigenvectors (to_basis)
    basis = ops[N:]           # [3N, K]  [evecs ; gXe ; gYe]

    # ---- to_basis: (mass*evecs)^T @ x -> [K, C]
    x_spec = jax.lax.dot_general(em, x, (((0,), (0,)), ((), ())),
                                 preferred_element_type=jnp.float32)

    # ---- LaplacianBlock (with_power=False): pure spectral diffusion
    x_spec = x_spec * jnp.exp(-evals * jnp.abs(dt_ref[...]))

    # ---- fused from_basis + spectral gradients: one [3N,K]@[K,C] matmul
    r = jnp.dot(basis, x_spec, preferred_element_type=jnp.float32)   # [3N, C]
    x_lap = r[:N]
    gxv = r[N:2 * N]
    gyv = r[2 * N:]
    gv = r[N:]                # [2N, C] (gxv stacked over gyv)

    # ---- PairwiseDot (linear_complex=True): 2 stacked matmuls instead of 4
    t_re = jnp.dot(gv, wre_ref[...], preferred_element_type=jnp.float32)
    t_im = jnp.dot(gv, wim_ref[...], preferred_element_type=jnp.float32)
    breal = t_re[:N] - t_im[N:]
    bimag = t_im[:N] + t_re[N:]
    dots = jnp.tanh(gxv * breal + gyv * bimag)

    # ---- MiniMLP on concat(x, x_lap, dots): W1 split into three CxC blocks,
    #      so no 3C-lane concat is materialized.
    h = (jnp.dot(x, w1a_ref[...], preferred_element_type=jnp.float32)
         + jnp.dot(x_lap, w1b_ref[...], preferred_element_type=jnp.float32)
         + jnp.dot(dots, w1c_ref[...], preferred_element_type=jnp.float32)
         + b1_ref[...])
    h = jnp.maximum(h, 0.0)
    h = jnp.maximum(
        jnp.dot(h, w2_ref[...], preferred_element_type=jnp.float32) + b2_ref[...],
        0.0)
    out = jnp.dot(h, w3_ref[...], preferred_element_type=jnp.float32) + b3_ref[...]

    # ---- residual
    o_ref[0] = (out + x).astype(o_ref.dtype)


def _tsn_vmem_limit(N, K, C):
    f32 = 4
    per_in = (N * C + K + 4 * N * K + C + 7 * C * C + 3 * C) * f32
    per_out = N * C * f32
    interm = (K * C + 3 * N * C + 2 * 2 * N * C + 3 * N * C) * f32
    est = 2 * (per_in + per_out) + interm          # double-buffered pipeline
    return int(min(max(4 * est, 16 * (1 << 20)), 64 * (1 << 20)))


def tsn_block(x, evals, ops, p):
    B, N, C = x.shape
    K = evals.shape[1]
    assert N % 8 == 0, "row-stacked spectral operators assume N % 8 == 0"
    # Split the [3C, C] MiniMLP first-layer weight into three CxC blocks
    # (matches concat order: x, x_lap, dots).
    w1a = p["w1_t"][:C]
    w1b = p["w1_t"][C:2 * C]
    w1c = p["w1_t"][2 * C:]
    return pl.pallas_call(
        _tsn_block_kernel,
        out_shape=jax.ShapeDtypeStruct((B, N, C), x.dtype),
        grid=(B,),
        in_specs=[
            pl.BlockSpec((1, N, C), lambda b: (b, 0, 0)),       # x
            pl.BlockSpec((1, K, 1), lambda b: (b, 0, 0)),       # evals
            pl.BlockSpec((1, 4 * N, K), lambda b: (b, 0, 0)),   # stacked spectral ops
            pl.BlockSpec((1, C), lambda b: (0, 0)),             # diffusion_time
            pl.BlockSpec((C, C), lambda b: (0, 0)),             # A_re^T
            pl.BlockSpec((C, C), lambda b: (0, 0)),             # A_im^T
            pl.BlockSpec((C, C), lambda b: (0, 0)),             # W1a^T
            pl.BlockSpec((C, C), lambda b: (0, 0)),             # W1b^T
            pl.BlockSpec((C, C), lambda b: (0, 0)),             # W1c^T
            pl.BlockSpec((1, C), lambda b: (0, 0)),             # b1
            pl.BlockSpec((C, C), lambda b: (0, 0)),             # W2^T
            pl.BlockSpec((1, C), lambda b: (0, 0)),             # b2
            pl.BlockSpec((C, C), lambda b: (0, 0)),             # W3^T
            pl.BlockSpec((1, C), lambda b: (0, 0)),             # b3
        ],
        out_specs=pl.BlockSpec((1, N, C), lambda b: (b, 0, 0)),
        compiler_params=pltpu.CompilerParams(
            dimension_semantics=("parallel",),
            vmem_limit_bytes=_tsn_vmem_limit(N, K, C)),
    )(x, evals[..., None], ops, p["dt"].reshape(1, C),
      p["wre_t"], p["wim_t"],
      w1a, w1b, w1c, p["b1"].reshape(1, C),
      p["w2_t"], p["b2"].reshape(1, C),
      p["w3_t"], p["b3"].reshape(1, C))


# ---------------------------------------------------------------------------
# Model wrapper (glue in plain JAX)
# ---------------------------------------------------------------------------
def asap_diffusion_net(params, x_in, mass, evals, evecs, gradX, gradY):
    HI = jax.lax.Precision.HIGHEST
    # Block-invariant spectral operators, computed ONCE and reused by every
    # block:  mass-weighted eigenvectors (to_basis), raw eigenvectors
    # (from_basis), and the gradient matrices folded through the basis so the
    # per-block kernel never touches an NxN operand.
    em = evecs * mass[..., None]                                      # [B,N,K]
    gXe = jnp.einsum('bnm,bmk->bnk', gradX, evecs, precision=HI)      # [B,N,K]
    gYe = jnp.einsum('bnm,bmk->bnk', gradY, evecs, precision=HI)      # [B,N,K]
    ops = jnp.concatenate([em, evecs, gXe, gYe], axis=1)              # [B,4N,K]

    x = linear(x_in, params["first_w_t"], params["first_b"])
    for bp in params["blocks"]:
        x = tsn_block(x, evals, ops, bp)
    x = linear(x, params["last_w_t"], params["last_b"])
    # outputs_at == 'vertices', last_activation is None -> return as-is.
    # TODO(synk): 'edges'/'faces' gather and 'global_mean' output modes not implemented.
    return x


def init_params(key, C_in, C_out, C_width, N_block):
    def lin_init(k, fan_in, fan_out):
        kw, kb = jax.random.split(k)
        bound = 1.0 / float(jnp.sqrt(float(fan_in)))
        w_t = jax.random.uniform(kw, (fan_in, fan_out), jnp.float32, -bound, bound)
        b = jax.random.uniform(kb, (fan_out,), jnp.float32, -bound, bound)
        return w_t, b

    keys = jax.random.split(key, 2 + N_block)
    first_w_t, first_b = lin_init(keys[0], C_in, C_width)
    last_w_t, last_b = lin_init(keys[1], C_width, C_out)
    C = C_width
    blocks = []
    for i in range(N_block):
        bk = jax.random.split(keys[2 + i], 5)
        wre_t, _ = lin_init(bk[0], C, C)
        wim_t, _ = lin_init(bk[1], C, C)
        w1_t, b1 = lin_init(bk[2], 3 * C, C)   # MiniMLP layer sizes [3C, C, C, C]
        w2_t, b2 = lin_init(bk[3], C, C)
        w3_t, b3 = lin_init(bk[4], C, C)
        blocks.append(dict(
            dt=jnp.full((C,), 1e-4, jnp.float32),   # diffusion_time init = 0.0001
            wre_t=wre_t, wim_t=wim_t,
            w1_t=w1_t, b1=b1, w2_t=w2_t, b2=b2, w3_t=w3_t, b3=b3))
    return dict(first_w_t=first_w_t, first_b=first_b,
                last_w_t=last_w_t, last_b=last_b, blocks=blocks)


# ---------------------------------------------------------------------------
# Pure-JAX reference (full-precision matmuls) for verification
# ---------------------------------------------------------------------------
def reference_forward(params, x_in, mass, evals, evecs, gradX, gradY):
    HI = jax.lax.Precision.HIGHEST
    mm = lambda a, b: jnp.matmul(a, b, precision=HI)
    x = mm(x_in, params["first_w_t"]) + params["first_b"]
    for bp in params["blocks"]:
        xm = x * mass[..., None]
        x_spec = jnp.einsum('bnk,bnc->bkc', evecs, xm, precision=HI)
        diff = jnp.exp(-evals[..., None] * jnp.abs(bp["dt"])[None, None, :])
        x_spec = x_spec * diff
        x_lap = jnp.einsum('bnk,bkc->bnc', evecs, x_spec, precision=HI)
        gx = jnp.einsum('bnm,bmc->bnc', gradX, x_lap, precision=HI)
        gy = jnp.einsum('bnm,bmc->bnc', gradY, x_lap, precision=HI)
        breal = mm(gx, bp["wre_t"]) - mm(gy, bp["wim_t"])
        bimag = mm(gy, bp["wre_t"]) + mm(gx, bp["wim_t"])
        dots = jnp.tanh(gx * breal + gy * bimag)
        comb = jnp.concatenate([x, x_lap, dots], axis=-1)
        h = jax.nn.relu(mm(comb, bp["w1_t"]) + bp["b1"])
        h = jax.nn.relu(mm(h, bp["w2_t"]) + bp["b2"])
        x = mm(h, bp["w3_t"]) + bp["b3"] + x
    return mm(x, params["last_w_t"]) + params["last_b"]


if __name__ == "__main__":
    B, N, K = 2, 64, 16
    C_in, C_out, C_width, N_block = 4, 4, 128, 2   # C_width=128 -> lane-dense

    key = jax.random.PRNGKey(0)
    k_inp, k_par = jax.random.split(key)
    ks = jax.random.split(k_inp, 6)
    x_in = jax.random.normal(ks[0], (B, N, C_in), jnp.float32)
    mass = jax.random.uniform(ks[1], (B, N), jnp.float32, 0.5, 1.5)
    evals = jnp.sort(jax.random.uniform(ks[2], (B, K), jnp.float32, 0.0, 10.0), axis=-1)
    evecs = jax.random.normal(ks[3], (B, N, K), jnp.float32) / jnp.sqrt(float(N))
    gradX = jax.random.normal(ks[4], (B, N, N), jnp.float32) / jnp.sqrt(float(N))
    gradY = jax.random.normal(ks[5], (B, N, N), jnp.float32) / jnp.sqrt(float(N))

    params = init_params(k_par, C_in, C_out, C_width, N_block)

    fwd = jax.jit(asap_diffusion_net)
    out = jax.block_until_ready(
        fwd(params, x_in, mass, evals, evecs, gradX, gradY))
    ref = reference_forward(params, x_in, mass, evals, evecs, gradX, gradY)

    assert out.shape == (B, N, C_out), out.shape
    err = float(jnp.max(jnp.abs(out - ref)))
    assert err < 2e-4, f"mismatch vs reference: {err}"
    print("KERNEL_OK")
</pallas_src>

<mosaic_0001>
module attributes {stable_mosaic.version = 11 : i64} {
  func.func @_linear_kernel(%arg0: memref<128x4xf32, #tpu.memory_space<vmem>>, %arg1: memref<4x128xf32, #tpu.memory_space<vmem>>, %arg2: memref<1x128xf32, #tpu.memory_space<vmem>>, %arg3: memref<128x128xf32, #tpu.memory_space<vmem>>) attributes {dimension_semantics = [], scalar_prefetch = 0 : i64, scratch_operands = 0 : i64, tpu.core_type = #tpu.core_type<tc>} {
    %c0 = arith.constant 0 : index
    %c0_0 = arith.constant 0 : index
    %0 = vector.load %arg0[%c0, %c0_0] : memref<128x4xf32, #tpu.memory_space<vmem>>, vector<128x4xf32>
    %c0_1 = arith.constant 0 : index
    %c0_2 = arith.constant 0 : index
    %1 = vector.load %arg1[%c0_1, %c0_2] : memref<4x128xf32, #tpu.memory_space<vmem>>, vector<4x128xf32>
    %cst = arith.constant dense<0.000000e+00> : vector<128x128xf32>
    %2 = tpu.matmul %0, %1, %cst {dimension_numbers = #tpu.dot_dimension_numbers<[1], [0], [0], [1], [0, 0, 1, 1], [], []>} : vector<128x4xf32>, vector<4x128xf32>, vector<128x128xf32> -> vector<128x128xf32>
    %c0_3 = arith.constant 0 : index
    %c0_4 = arith.constant 0 : index
    %3 = vector.load %arg2[%c0_3, %c0_4] : memref<1x128xf32, #tpu.memory_space<vmem>>, vector<1x128xf32>
    %4 = vector.broadcast %3 : vector<1x128xf32> to vector<128x128xf32>
    %5 = arith.addf %2, %4 : vector<128x128xf32>
    %c0_5 = arith.constant 0 : index
    %c0_6 = arith.constant 0 : index
    %6 = vector.load %arg3[%c0_5, %c0_6] : memref<128x128xf32, #tpu.memory_space<vmem>>, vector<128x128xf32>
    tpu.vector_store %arg3[%c0_5, %c0_6], %5 {strides = array<i32>} : memref<128x128xf32, #tpu.memory_space<vmem>>, vector<128x128xf32>,
    return
  }
}

module attributes {stable_mosaic.version = 11 : i64} {
  func.func @_tsn_block_kernel(%arg0: i32, %arg1: memref<1x64x128xf32, #tpu.memory_space<vmem>>, %arg2: memref<1x16x1xf32, #tpu.memory_space<vmem>>, %arg3: memref<1x256x16xf32, #tpu.memory_space<vmem>>, %arg4: memref<1x128xf32, #tpu.memory_space<vmem>>, %arg5: memref<128x128xf32, #tpu.memory_space<vmem>>, %arg6: memref<128x128xf32, #tpu.memory_space<vmem>>, %arg7: memref<128x128xf32, #tpu.memory_space<vmem>>, %arg8: memref<128x128xf32, #tpu.memory_space<vmem>>, %arg9: memref<128x128xf32, #tpu.memory_space<vmem>>, %arg10: memref<1x128xf32, #tpu.memory_space<vmem>>, %arg11: memref<128x128xf32, #tpu.memory_space<vmem>>, %arg12: memref<1x128xf32, #tpu.memory_space<vmem>>, %arg13: memref<128x128xf32, #tpu.memory_space<vmem>>, %arg14: memref<1x128xf32, #tpu.memory_space<vmem>>, %arg15: memref<1x64x128xf32, #tpu.memory_space<vmem>>) attributes {dimension_semantics = [#tpu.dimension_semantics<parallel>], iteration_bounds = array<i64: 2>, scalar_prefetch = 0 : i64, scratch_operands = 0 : i64, tpu.core_type = #tpu.core_type<tc>, window_params = [{transform_indices = @transform_0, window_bounds = array<i64: 1, 64, 128>}, {transform_indices = @transform_1, window_bounds = array<i64: 1, 16, 1>}, {transform_indices = @transform_2, window_bounds = array<i64: 1, 256, 16>}, {pipeline_mode = #tpu.pipeline_mode<synchronous>, transform_indices = @transform_3, window_bounds = array<i64: 1, 128>}, {pipeline_mode = #tpu.pipeline_mode<synchronous>, transform_indices = @transform_4, window_bounds = array<i64: 128, 128>}, {pipeline_mode = #tpu.pipeline_mode<synchronous>, transform_indices = @transform_5, window_bounds = array<i64: 128, 128>}, {pipeline_mode = #tpu.pipeline_mode<synchronous>, transform_indices = @transform_6, window_bounds = array<i64: 128, 128>}, {pipeline_mode = #tpu.pipeline_mode<synchronous>, transform_indices = @transform_7, window_bounds = array<i64: 128, 128>}, {pipeline_mode = #tpu.pipeline_mode<synchronous>, transform_indices = @transform_8, window_bounds = array<i64: 128, 128>}, {pipeline_mode = #tpu.pipeline_mode<synchronous>, transform_indices = @transform_9, window_bounds = array<i64: 1, 128>}, {pipeline_mode = #tpu.pipeline_mode<synchronous>, transform_indices = @transform_10, window_bounds = array<i64: 128, 128>}, {pipeline_mode = #tpu.pipeline_mode<synchronous>, transform_indices = @transform_11, window_bounds = array<i64: 1, 128>}, {pipeline_mode = #tpu.pipeline_mode<synchronous>, transform_indices = @transform_12, window_bounds = array<i64: 128, 128>}, {pipeline_mode = #tpu.pipeline_mode<synchronous>, transform_indices = @transform_13, window_bounds = array<i64: 1, 128>}, {transform_indices = @transform_14, window_bounds = array<i64: 1, 64, 128>}]} {
    %c0 = arith.constant 0 : index
    %c0_0 = arith.constant 0 : index
    %c0_1 = arith.constant 0 : index
    %0 = vector.load %arg1[%c0, %c0_0, %c0_1] : memref<1x64x128xf32, #tpu.memory_space<vmem>>, vector<1x64x128xf32>
    %1 = vector.shape_cast %0 : vector<1x64x128xf32> to vector<64x128xf32>
    %c0_2 = arith.constant 0 : index
    %c0_3 = arith.constant 0 : index
    %c0_4 = arith.constant 0 : index
    %2 = vector.load %arg2[%c0_2, %c0_3, %c0_4] : memref<1x16x1xf32, #tpu.memory_space<vmem>>, vector<1x16x1xf32>
    %3 = vector.shape_cast %2 : vector<1x16x1xf32> to vector<16x1xf32>
    %c0_5 = arith.constant 0 : index
    %c0_6 = arith.constant 0 : index
    %c0_7 = arith.constant 0 : index
    %4 = vector.load %arg3[%c0_5, %c0_6, %c0_7] : memref<1x256x16xf32, #tpu.memory_space<vmem>>, vector<1x256x16xf32>
    %5 = vector.shape_cast %4 : vector<1x256x16xf32> to vector<256x16xf32>
    %6 = vector.extract_strided_slice %5 {offsets = [0, 0], sizes = [64, 16], strides = [1, 1]} : vector<256x16xf32> to vector<64x16xf32>
    %7 = vector.extract_strided_slice %5 {offsets = [64, 0], sizes = [192, 16], strides = [1, 1]} : vector<256x16xf32> to vector<192x16xf32>
    %cst = arith.constant dense<0.000000e+00> : vector<16x128xf32>
    %8 = tpu.matmul %6, %1, %cst {dimension_numbers = #tpu.dot_dimension_numbers<[0], [0], [1], [1], [0, 1, 1, 1], [], []>} : vector<64x16xf32>, vector<64x128xf32>, vector<16x128xf32> -> vector<16x128xf32>
    %cst_8 = arith.constant 0.000000e+00 : f32
    %9 = vector.broadcast %cst_8 : f32 to vector<16x1xf32>
    %10 = arith.subf %9, %3 : vector<16x1xf32>
    %c0_9 = arith.constant 0 : index
    %c0_10 = arith.constant 0 : index
    %11 = vector.load %arg4[%c0_9, %c0_10] : memref<1x128xf32, #tpu.memory_space<vmem>>, vector<1x128xf32>
    %12 = math.absf %11 : vector<1x128xf32>
    %13 = vector.broadcast %10 : vector<16x1xf32> to vector<16x128xf32>
    %14 = vector.broadcast %12 : vector<1x128xf32> to vector<16x128xf32>
    %15 = arith.mulf %13, %14 : vector<16x128xf32>
    %16 = math.exp %15 : vector<16x128xf32>
    %17 = arith.mulf %8, %16 : vector<16x128xf32>
    %cst_11 = arith.constant dense<0.000000e+00> : vector<192x128xf32>
    %18 = tpu.matmul %7, %17, %cst_11 {dimension_numbers = #tpu.dot_dimension_numbers<[1], [0], [0], [1], [0, 0, 1, 1], [], []>} : vector<192x16xf32>, vector<16x128xf32>, vector<192x128xf32> -> vector<192x128xf32>
    %19 = vector.extract_strided_slice %18 {offsets = [0, 0], sizes = [64, 128], strides = [1, 1]} : vector<192x128xf32> to vector<64x128xf32>
    %20 = vector.extract_strided_slice %18 {offsets = [64, 0], sizes = [64, 128], strides = [1, 1]} : vector<192x128xf32> to vector<64x128xf32>
    %21 = vector.extract_strided_slice %18 {offsets = [128, 0], sizes = [64, 128], strides = [1, 1]} : vector<192x128xf32> to vector<64x128xf32>
    %22 = vector.extract_strided_slice %18 {offsets = [64, 0], sizes = [128, 128], strides = [1, 1]} : vector<192x128xf32> to vector<128x128xf32>
    %c0_12 = arith.constant 0 : index
    %c0_13 = arith.constant 0 : index
    %23 = vector.load %arg5[%c0_12, %c0_13] : memref<128x128xf32, #tpu.memory_space<vmem>>, vector<128x128xf32>
    %cst_14 = arith.constant dense<0.000000e+00> : vector<128x128xf32>
    %24 = tpu.matmul %22, %23, %cst_14 {dimension_numbers = #tpu.dot_dimension_numbers<[1], [0], [0], [1], [0, 0, 1, 1], [], []>} : vector<128x128xf32>, vector<128x128xf32>, vector<128x128xf32> -> vector<128x128xf32>
    %c0_15 = arith.constant 0 : index
    %c0_16 = arith.constant 0 : index
    %25 = vector.load %arg6[%c0_15, %c0_16] : memref<128x128xf32, #tpu.memory_space<vmem>>, vector<128x128xf32>
    %cst_17 = arith.constant dense<0.000000e+00> : vector<128x128xf32>
    %26 = tpu.matmul %22, %25, %cst_17 {dimension_numbers = #tpu.dot_dimension_numbers<[1], [0], [0], [1], [0, 0, 1, 1], [], []>} : vector<128x128xf32>, vector<128x128xf32>, vector<128x128xf32> -> vector<128x128xf32>
    %27 = vector.extract_strided_slice %24 {offsets = [0, 0], sizes = [64, 128], strides = [1, 1]} : vector<128x128xf32> to vector<64x128xf32>
    %28 = vector.extract_strided_slice %26 {offsets = [64, 0], sizes = [64, 128], strides = [1, 1]} : vector<128x128xf32> to vector<64x128xf32>
    %29 = arith.subf %27, %28 : vector<64x128xf32>
    %30 = vector.extract_strided_slice %26 {offsets = [0, 0], sizes = [64, 128], strides = [1, 1]} : vector<128x128xf32> to vector<64x128xf32>
    %31 = vector.extract_strided_slice %24 {offsets = [64, 0], sizes = [64, 128], strides = [1, 1]} : vector<128x128xf32> to vector<64x128xf32>
    %32 = arith.addf %30, %31 : vector<64x128xf32>
    %33 = arith.mulf %20, %29 : vector<64x128xf32>
    %34 = arith.mulf %21, %32 : vector<64x128xf32>
    %35 = arith.addf %33, %34 : vector<64x128xf32>
    %36 = math.tanh %35 : vector<64x128xf32>
    %c0_18 = arith.constant 0 : index
    %c0_19 = arith.constant 0 : index
    %37 = vector.load %arg7[%c0_18, %c0_19] : memref<128x128xf32, #tpu.memory_space<vmem>>, vector<128x128xf32>
    %cst_20 = arith.constant dense<0.000000e+00> : vector<64x128xf32>
    %38 = tpu.matmul %1, %37, %cst_20 {dimension_numbers = #tpu.dot_dimension_numbers<[1], [0], [0], [1], [0, 0, 1, 1], [], []>} : vector<64x128xf32>, vector<128x128xf32>, vector<64x128xf32> -> vector<64x128xf32>
    %c0_21 = arith.constant 0 : index
    %c0_22 = arith.constant 0 : index
    %39 = vector.load %arg8[%c0_21, %c0_22] : memref<128x128xf32, #tpu.memory_space<vmem>>, vector<128x128xf32>
    %cst_23 = arith.constant dense<0.000000e+00> : vector<64x128xf32>
    %40 = tpu.matmul %19, %39, %cst_23 {dimension_numbers = #tpu.dot_dimension_numbers<[1], [0], [0], [1], [0, 0, 1, 1], [], []>} : vector<64x128xf32>, vector<128x128xf32>, vector<64x128xf32> -> vector<64x128xf32>
    %41 = arith.addf %38, %40 : vector<64x128xf32>
    %c0_24 = arith.constant 0 : index
    %c0_25 = arith.constant 0 : index
    %42 = vector.load %arg9[%c0_24, %c0_25] : memref<128x128xf32, #tpu.memory_space<vmem>>, vector<128x128xf32>
    %cst_26 = arith.constant dense<0.000000e+00> : vector<64x128xf32>
    %43 = tpu.matmul %36, %42, %cst_26 {dimension_numbers = #tpu.dot_dimension_numbers<[1], [0], [0], [1], [0, 0, 1, 1], [], []>} : vector<64x128xf32>, vector<128x128xf32>, vector<64x128xf32> -> vector<64x128xf32>
    %44 = arith.addf %41, %43 : vector<64x128xf32>
    %c0_27 = arith.constant 0 : index
    %c0_28 = arith.constant 0 : index
    %45 = vector.load %arg10[%c0_27, %c0_28] : memref<1x128xf32, #tpu.memory_space<vmem>>, vector<1x128xf32>
    %46 = vector.broadcast %45 : vector<1x128xf32> to vector<64x128xf32>
    %47 = arith.addf %44, %46 : vector<64x128xf32>
    %cst_29 = arith.constant 0.000000e+00 : f32
    %48 = vector.broadcast %cst_29 : f32 to vector<64x128xf32>
    %49 = arith.maximumf %47, %48 : vector<64x128xf32>
    %c0_30 = arith.constant 0 : index
    %c0_31 = arith.constant 0 : index
    %50 = vector.load %arg11[%c0_30, %c0_31] : memref<128x128xf32, #tpu.memory_space<vmem>>, vector<128x128xf32>
    %cst_32 = arith.constant dense<0.000000e+00> : vector<64x128xf32>
    %51 = tpu.matmul %49, %50, %cst_32 {dimension_numbers = #tpu.dot_dimension_numbers<[1], [0], [0], [1], [0, 0, 1, 1], [], []>} : vector<64x128xf32>, vector<128x128xf32>, vector<64x128xf32> -> vector<64x128xf32>
    %c0_33 = arith.constant 0 : index
    %c0_34 = arith.constant 0 : index
    %52 = vector.load %arg12[%c0_33, %c0_34] : memref<1x128xf32, #tpu.memory_space<vmem>>, vector<1x128xf32>
    %53 = vector.broadcast %52 : vector<1x128xf32> to vector<64x128xf32>
    %54 = arith.addf %51, %53 : vector<64x128xf32>
    %cst_35 = arith.constant 0.000000e+00 : f32
    %55 = vector.broadcast %cst_35 : f32 to vector<64x128xf32>
    %56 = arith.maximumf %54, %55 : vector<64x128xf32>
    %c0_36 = arith.constant 0 : index
    %c0_37 = arith.constant 0 : index
    %57 = vector.load %arg13[%c0_36, %c0_37] : memref<128x128xf32, #tpu.memory_space<vmem>>, vector<128x128xf32>
    %cst_38 = arith.constant dense<0.000000e+00> : vector<64x128xf32>
    %58 = tpu.matmul %56, %57, %cst_38 {dimension_numbers = #tpu.dot_dimension_numbers<[1], [0], [0], [1], [0, 0, 1, 1], [], []>} : vector<64x128xf32>, vector<128x128xf32>, vector<64x128xf32> -> vector<64x128xf32>
    %c0_39 = arith.constant 0 : index
    %c0_40 = arith.constant 0 : index
    %59 = vector.load %arg14[%c0_39, %c0_40] : memref<1x128xf32, #tpu.memory_space<vmem>>, vector<1x128xf32>
    %60 = vector.broadcast %59 : vector<1x128xf32> to vector<64x128xf32>
    %61 = arith.addf %58, %60 : vector<64x128xf32>
    %62 = arith.addf %61, %1 : vector<64x128xf32>
    %c0_41 = arith.constant 0 : index
    %c0_42 = arith.constant 0 : index
    %c0_43 = arith.constant 0 : index
    %63 = vector.load %arg15[%c0_41, %c0_42, %c0_43] : memref<1x64x128xf32, #tpu.memory_space<vmem>>, vector<1x64x128xf32>
    %64 = vector.shape_cast %63 : vector<1x64x128xf32> to vector<64x128xf32>
    %65 = vector.shape_cast %62 : vector<64x128xf32> to vector<1x64x128xf32>
    tpu.vector_store %arg15[%c0_41, %c0_42, %c0_43], %65 {strides = array<i32>} : memref<1x64x128xf32, #tpu.memory_space<vmem>>, vector<1x64x128xf32>,
    return
  }
  func.func @transform_0(%arg0: i32) -> (i32, i32, i32) {
    %c0_i32 = arith.constant 0 : i32
    %c0_i32_0 = arith.constant 0 : i32
    %c0_i32_1 = arith.constant 0 : i32
    return %arg0, %c0_i32, %c0_i32_0 : i32, i32, i32
  }
  func.func @transform_1(%arg0: i32) -> (i32, i32, i32) {
    %c0_i32 = arith.constant 0 : i32
    %c0_i32_0 = arith.constant 0 : i32
    %c0_i32_1 = arith.constant 0 : i32
    return %arg0, %c0_i32, %c0_i32_0 : i32, i32, i32
  }
  func.func @transform_2(%arg0: i32) -> (i32, i32, i32) {
    %c0_i32 = arith.constant 0 : i32
    %c0_i32_0 = arith.constant 0 : i32
    %c0_i32_1 = arith.constant 0 : i32
    return %arg0, %c0_i32, %c0_i32_0 : i32, i32, i32
  }
  func.func @transform_3(%arg0: i32) -> (i32, i32) {
    %c0_i32 = arith.constant 0 : i32
    %c0_i32_0 = arith.constant 0 : i32
    %c0_i32_1 = arith.constant 0 : i32
    return %c0_i32, %c0_i32_0 : i32, i32
  }
  func.func @transform_4(%arg0: i32) -> (i32, i32) {
    %c0_i32 = arith.constant 0 : i32
    %c0_i32_0 = arith.constant 0 : i32
    %c0_i32_1 = arith.constant 0 : i32
    return %c0_i32, %c0_i32_0 : i32, i32
  }
  func.func @transform_5(%arg0: i32) -> (i32, i32) {
    %c0_i32 = arith.constant 0 : i32
    %c0_i32_0 = arith.constant 0 : i32
    %c0_i32_1 = arith.constant 0 : i32
    return %c0_i32, %c0_i32_0 : i32, i32
  }
  func.func @transform_6(%arg0: i32) -> (i32, i32) {
    %c0_i32 = arith.constant 0 : i32
    %c0_i32_0 = arith.constant 0 : i32
    %c0_i32_1 = arith.constant 0 : i32
    return %c0_i32, %c0_i32_0 : i32, i32
  }
  func.func @transform_7(%arg0: i32) -> (i32, i32) {
    %c0_i32 = arith.constant 0 : i32
    %c0_i32_0 = arith.constant 0 : i32
    %c0_i32_1 = arith.constant 0 : i32
    return %c0_i32, %c0_i32_0 : i32, i32
  }
  func.func @transform_8(%arg0: i32) -> (i32, i32) {
    %c0_i32 = arith.constant 0 : i32
    %c0_i32_0 = arith.constant 0 : i32
    %c0_i32_1 = arith.constant 0 : i32
    return %c0_i32, %c0_i32_0 : i32, i32
  }
  func.func @transform_9(%arg0: i32) -> (i32, i32) {
    %c0_i32 = arith.constant 0 : i32
    %c0_i32_0 = arith.constant 0 : i32
    %c0_i32_1 = arith.constant 0 : i32
    return %c0_i32, %c0_i32_0 : i32, i32
  }
  func.func @transform_10(%arg0: i32) -> (i32, i32) {
    %c0_i32 = arith.constant 0 : i32
    %c0_i32_0 = arith.constant 0 : i32
    %c0_i32_1 = arith.constant 0 : i32
    return %c0_i32, %c0_i32_0 : i32, i32
  }
  func.func @transform_11(%arg0: i32) -> (i32, i32) {
    %c0_i32 = arith.constant 0 : i32
    %c0_i32_0 = arith.constant 0 : i32
    %c0_i32_1 = arith.constant 0 : i32
    return %c0_i32, %c0_i32_0 : i32, i32
  }
  func.func @transform_12(%arg0: i32) -> (i32, i32) {
    %c0_i32 = arith.constant 0 : i32
    %c0_i32_0 = arith.constant 0 : i32
    %c0_i32_1 = arith.constant 0 : i32
    return %c0_i32, %c0_i32_0 : i32, i32
  }
  func.func @transform_13(%arg0: i32) -> (i32, i32) {
    %c0_i32 = arith.constant 0 : i32
    %c0_i32_0 = arith.constant 0 : i32
    %c0_i32_1 = arith.constant 0 : i32
    return %c0_i32, %c0_i32_0 : i32, i32
  }
  func.func @transform_14(%arg0: i32) -> (i32, i32, i32) {
    %c0_i32 = arith.constant 0 : i32
    %c0_i32_0 = arith.constant 0 : i32
    %c0_i32_1 = arith.constant 0 : i32
    return %arg0, %c0_i32, %c0_i32_0 : i32, i32, i32
  }
}

module attributes {stable_mosaic.version = 11 : i64} {
  func.func @_linear_kernel(%arg0: memref<128x128xf32, #tpu.memory_space<vmem>>, %arg1: memref<128x4xf32, #tpu.memory_space<vmem>>, %arg2: memref<1x4xf32, #tpu.memory_space<vmem>>, %arg3: memref<128x4xf32, #tpu.memory_space<vmem>>) attributes {dimension_semantics = [], scalar_prefetch = 0 : i64, scratch_operands = 0 : i64, tpu.core_type = #tpu.core_type<tc>} {
    %c0 = arith.constant 0 : index
    %c0_0 = arith.constant 0 : index
    %0 = vector.load %arg0[%c0, %c0_0] : memref<128x128xf32, #tpu.memory_space<vmem>>, vector<128x128xf32>
    %c0_1 = arith.constant 0 : index
    %c0_2 = arith.constant 0 : index
    %1 = vector.load %arg1[%c0_1, %c0_2] : memref<128x4xf32, #tpu.memory_space<vmem>>, vector<128x4xf32>
    %cst = arith.constant dense<0.000000e+00> : vector<128x4xf32>
    %2 = tpu.matmul %0, %1, %cst {dimension_numbers = #tpu.dot_dimension_numbers<[1], [0], [0], [1], [0, 0, 1, 1], [], []>} : vector<128x128xf32>, vector<128x4xf32>, vector<128x4xf32> -> vector<128x4xf32>
    %c0_3 = arith.constant 0 : index
    %c0_4 = arith.constant 0 : index
    %3 = vector.load %arg2[%c0_3, %c0_4] : memref<1x4xf32, #tpu.memory_space<vmem>>, vector<1x4xf32>
    %4 = vector.broadcast %3 : vector<1x4xf32> to vector<128x4xf32>
    %5 = arith.addf %2, %4 : vector<128x4xf32>
    %c0_5 = arith.constant 0 : index
    %c0_6 = arith.constant 0 : index
    %6 = vector.load %arg3[%c0_5, %c0_6] : memref<128x4xf32, #tpu.memory_space<vmem>>, vector<128x4xf32>
    tpu.vector_store %arg3[%c0_5, %c0_6], %5 {strides = array<i32>} : memref<128x4xf32, #tpu.memory_space<vmem>>, vector<128x4xf32>,
    return
  }
}

</mosaic_0001>

<bundles_post_ra>
// kernel: asap_diffusion_net.4
= control target key start
LH: loop header
LB: loop body
LE: loop exit
PB: predicated region body
PF: predicated region fallthrough
CT: control target
= control target key end

     0   :  { %vm87_vm0 = vcmask 1043456   ;;  %vm38_vm1 = vcmask 31744   ;;  %s457_s1 = inlined_call_operand.vmem [shape: f32[4,128], index: 1, kind: input, shape index: {}]   ;;  %s458_s0 = inlined_call_operand.vmem [shape: f32[128,4], index: 0, kind: input, shape index: {}]   ;;  %s459_s2 = inlined_call_operand.vmem [shape: f32[1,128], index: 2, kind: input, shape index: {}]   ;;  %s460_s3 = inlined_call_operand.vmem [shape: f32[128,128], index: 3, kind: output, shape index: {}]  }
   0x1   :  { %v30_v0 = vld [vmem:[%s457_s1] sm:$0xf]  ;;  %v15_v3 = vld [vmem:[%s458_s0 + $0x8] sm:$0xff]  ;;  %v16_v5 = vld [vmem:[%s458_s0 + $0x10] sm:$0xff] }
   0x2   :  { %v14_v1 = vld [vmem:[%s458_s0] sm:$0xff]  ;;  %291 = vmatprep.subr.msk.mxu0 %vm87_vm0, %v30_v0  ;;  %317 = vmatprep.subr.msk.mxu1 %vm87_vm0, %v30_v0  ;;  %v23_v4 = vld [vmem:[%s458_s0 + $0x48] sm:$0xff]  ;;  %v24_v6 = vld [vmem:[%s458_s0 + $0x50] sm:$0xff] }
   0x3   :  { %v22_v2 = vld [vmem:[%s458_s0 + $0x40] sm:$0xff]  ;;  %292 = vmatpush3.msk.msra.mxu0 %vm87_vm0, %v30_v0  ;;  %318 = vmatpush3.msk.msra.mxu1 %vm87_vm0, %v30_v0  ;;  %v17_v7 = vld [vmem:[%s458_s0 + $0x18] sm:$0xff]  ;;  %v19_v11 = vld [vmem:[%s458_s0 + $0x28] sm:$0xff] }
   0x4   :  { %293 = vmatprep.mubr.msk.f32.mxu0 %vm38_vm1, %v14_v1  ;;  %305 = vmatprep.mubr.msk.f32.mxu1 %vm38_vm1, %v22_v2  ;;  %v25_v8 = vld [vmem:[%s458_s0 + $0x58] sm:$0xff]  ;;  %v18_v9 = vld [vmem:[%s458_s0 + $0x20] sm:$0xff]  ;;  %v27_v12 = vld [vmem:[%s458_s0 + $0x68] sm:$0xff] }
   0x5   :  { %294 = vmatmul.mubr.msk.f32.vlgmr.msra.gmra.mrb[0].mxu0 %vm38_vm1, %v15_v3  ;;  %306 = vmatmul.mubr.msk.f32.vlgmr.msra.gmra.mrb[0].mxu1 %vm38_vm1, %v23_v4  ;;  %v26_v10 = vld [vmem:[%s458_s0 + $0x60] sm:$0xff]  ;;  %v20_v13 = vld [vmem:[%s458_s0 + $0x30] sm:$0xff]  ;;  %v21_v15 = vld [vmem:[%s458_s0 + $0x38] sm:$0xff] }
   0x6   :  { %296 = vmatprep.mubr.msk.f32.mxu0 %vm38_vm1, %v16_v5  ;;  %308 = vmatprep.mubr.msk.f32.mxu1 %vm38_vm1, %v24_v6  ;;  %v28_v14 = vld [vmem:[%s458_s0 + $0x70] sm:$0xff]  ;;  %v29_v16 = vld [vmem:[%s458_s0 + $0x78] sm:$0xff]  ;;  %v256_v17 = vld [vmem:[%s459_s2] ss:$0 sm:$0xff] }
   0x9   :  { %297 = vmatmul.mubr.msk.f32.gmra.mrb[2].mxu0 %vm38_vm1, %v17_v7  ;;  %309 = vmatmul.mubr.msk.f32.gmra.mrb[2].mxu1 %vm38_vm1, %v25_v8 }
   0xa   :  { %299 = vmatprep.mubr.msk.f32.mxu0 %vm38_vm1, %v18_v9  ;;  %311 = vmatprep.mubr.msk.f32.mxu1 %vm38_vm1, %v26_v10 }
   0xd   :  { %300 = vmatmul.mubr.msk.f32.gmra.mrb[4].mxu0 %vm38_vm1, %v19_v11  ;;  %312 = vmatmul.mubr.msk.f32.gmra.mrb[4].mxu1 %vm38_vm1, %v27_v12 }
   0xe   :  { %302 = vmatprep.mubr.msk.f32.mxu0 %vm38_vm1, %v20_v13  ;;  %314 = vmatprep.mubr.msk.f32.mxu1 %vm38_vm1, %v28_v14 }
  0x11   :  { %303 = vmatmul.mubr.msk.f32.gmra.mrb[6].mxu0 %vm38_vm1, %v21_v15  ;;  %315 = vmatmul.mubr.msk.f32.gmra.mrb[6].mxu1 %vm38_vm1, %v29_v16 }
  0xd8   :  { %v295_v18 = vpop.f32.mrb[0].mxu0  ;;  %v307_v19 = vpop.f32.mrb[0].mxu1 }
  0xd9   :  { %v163_v20 = vadd.f32 %v295_v18, %v256_v17  ;;  %v203_v21 = vadd.f32 %v307_v19, %v256_v17  ;;  %v157_v22 = vpop.f32.mrb[1].mxu0  ;;  %v197_v23 = vpop.f32.mrb[1].mxu1 }
  0xda   :  { %v158_v24 = vadd.f32 %v256_v17, %v157_v22  ;;  %v198_v25 = vadd.f32 %v256_v17, %v197_v23 }
  0xdb   :  { %237 = vst [vmem:[%s460_s3 + $0x8] sm:$0xff] %v163_v20  ;;  %245 = vst [vmem:[%s460_s3 + $0x48] sm:$0xff] %v203_v21 }
  0xdc   :  { %236 = vst [vmem:[%s460_s3] sm:$0xff] %v158_v24  ;;  %244 = vst [vmem:[%s460_s3 + $0x40] sm:$0xff] %v198_v25  ;;  %v298_v26 = vpop.f32.mrb[2].mxu0  ;;  %v310_v27 = vpop.f32.mrb[2].mxu1 }
  0xdd   :  { %v173_v28 = vadd.f32 %v298_v26, %v256_v17  ;;  %v213_v29 = vadd.f32 %v310_v27, %v256_v17  ;;  %v167_v30 = vpop.f32.mrb[3].mxu0  ;;  %v207_v31 = vpop.f32.mrb[3].mxu1 }
  0xde   :  { %v168_v32 = vadd.f32 %v256_v17, %v167_v30  ;;  %v208_v33 = vadd.f32 %v256_v17, %v207_v31 }
  0xdf   :  { %239 = vst [vmem:[%s460_s3 + $0x18] sm:$0xff] %v173_v28  ;;  %247 = vst [vmem:[%s460_s3 + $0x58] sm:$0xff] %v213_v29 }
  0xe0   :  { %238 = vst [vmem:[%s460_s3 + $0x10] sm:$0xff] %v168_v32  ;;  %246 = vst [vmem:[%s460_s3 + $0x50] sm:$0xff] %v208_v33  ;;  %v301_v34 = vpop.f32.mrb[4].mxu0  ;;  %v313_v35 = vpop.f32.mrb[4].mxu1 }
  0xe1   :  { %v183_v36 = vadd.f32 %v301_v34, %v256_v17  ;;  %v223_v37 = vadd.f32 %v313_v35, %v256_v17  ;;  %v177_v38 = vpop.f32.mrb[5].mxu0  ;;  %v217_v39 = vpop.f32.mrb[5].mxu1 }
  0xe2   :  { %v178_v40 = vadd.f32 %v256_v17, %v177_v38  ;;  %v218_v41 = vadd.f32 %v256_v17, %v217_v39 }
  0xe3   :  { %241 = vst [vmem:[%s460_s3 + $0x28] sm:$0xff] %v183_v36  ;;  %249 = vst [vmem:[%s460_s3 + $0x68] sm:$0xff] %v223_v37 }
  0xe4   :  { %240 = vst [vmem:[%s460_s3 + $0x20] sm:$0xff] %v178_v40  ;;  %248 = vst [vmem:[%s460_s3 + $0x60] sm:$0xff] %v218_v41  ;;  %v304_v42 = vpop.f32.mrb[6].mxu0  ;;  %v316_v43 = vpop.f32.mrb[6].mxu1 }
  0xe5   :  { %v193_v44 = vadd.f32 %v304_v42, %v256_v17  ;;  %v233_v45 = vadd.f32 %v316_v43, %v256_v17  ;;  %v187_v46 = vpop.f32.mrb[7].mxu0  ;;  %v227_v47 = vpop.f32.mrb[7].mxu1 }
  0xe6   :  { %v188_v48 = vadd.f32 %v256_v17, %v187_v46  ;;  %v228_v49 = vadd.f32 %v256_v17, %v227_v47 }
  0xe7   :  { %243 = vst [vmem:[%s460_s3 + $0x38] sm:$0xff] %v193_v44  ;;  %251 = vst [vmem:[%s460_s3 + $0x78] sm:$0xff] %v233_v45 }
  0xe8   :  { %242 = vst [vmem:[%s460_s3 + $0x30] sm:$0xff] %v188_v48  ;;  %250 = vst [vmem:[%s460_s3 + $0x70] sm:$0xff] %v228_v49 }

// kernel: asap_diffusion_net.7
= control target key start
LH: loop header
LB: loop body
LE: loop exit
PB: predicated region body
PF: predicated region fallthrough
CT: control target
= control target key end

     0   :  { %vm198_vm0 = vcmask 31744   ;;  %s539_s1 = inlined_call_operand.vmem [shape: f32[128,4], index: 1, kind: input, shape index: {}]   ;;  %s540_s0 = inlined_call_operand.vmem [shape: f32[128,128], index: 0, kind: input, shape index: {}]   ;;  %s541_s2 = inlined_call_operand.vmem [shape: f32[1,4], index: 2, kind: input, shape index: {}]   ;;  %s542_s3 = inlined_call_operand.vmem [shape: f32[128,4], index: 3, kind: output, shape index: {}]  }
   0x1   :  { %v30_v0 = vld [vmem:[%s539_s1] sm:$0xff]  ;;  %v31_v1 = vld [vmem:[%s539_s1 + $0x8] sm:$0xff]  ;;  %v32_v2 = vld [vmem:[%s539_s1 + $0x10] sm:$0xff] }
   0x2   :  { %v308_v3 = vpack.c.bf16 %v31_v1, %v30_v0  ;;  %v33_v4 = vld [vmem:[%s539_s1 + $0x18] sm:$0xff]  ;;  %v34_v6 = vld [vmem:[%s539_s1 + $0x20] sm:$0xff]  ;;  %v35_v7 = vld [vmem:[%s539_s1 + $0x28] sm:$0xff] }
   0x3   :  { %v312_v5 = vpack.c.bf16 %v33_v4, %v32_v2  ;;  %v316_v8 = vpack.c.bf16 %v35_v7, %v34_v6  ;;  %v14_v9 = vld [vmem:[%s540_s0] sm:$0xff]  ;;  %v36_v11 = vld [vmem:[%s539_s1 + $0x30] sm:$0xff]  ;;  %v37_v12 = vld [vmem:[%s539_s1 + $0x38] sm:$0xff] }
   0x4   :  { %309 = vmatprep.subr.bf16.mxu0 %v308_v3  ;;  %340 = vmatprep.subr.bf16.mxu1 %v308_v3  ;;  %v22_v10 = vld [vmem:[%s540_s0 + $0x40] sm:$0xff]  ;;  %v320_v13 = vpack.c.bf16 %v37_v12, %v36_v11  ;;  %v39_v15 = vld [vmem:[%s539_s1 + $0x48] sm:$0xff]  ;;  %v40_v17 = vld [vmem:[%s539_s1 + $0x50] sm:$0xff] }
   0x5   :  { %311 = vmatpush3.bf16.msra.mxu0 %v308_v3  ;;  %348 = vmatpush3.bf16.msra.mxu1 %v308_v3  ;;  %v38_v14 = vld [vmem:[%s539_s1 + $0x40] sm:$0xff]  ;;  %v41_v18 = vld [vmem:[%s539_s1 + $0x58] sm:$0xff]  ;;  %v43_v21 = vld [vmem:[%s539_s1 + $0x68] sm:$0xff] }
   0x6   :  { %313 = vmatprep.subr.bf16.mxu0 %v312_v5  ;;  %341 = vmatprep.subr.bf16.mxu1 %v312_v5  ;;  %v324_v16 = vpack.c.bf16 %v39_v15, %v38_v14  ;;  %v328_v19 = vpack.c.bf16 %v41_v18, %v40_v17  ;;  %v42_v20 = vld [vmem:[%s539_s1 + $0x60] sm:$0xff]  ;;  %v44_v23 = vld [vmem:[%s539_s1 + $0x70] sm:$0xff]  ;;  %v45_v24 = vld [vmem:[%s539_s1 + $0x78] sm:$0xff] }
   0x7   :  { %284 = vmatprep.mubr.f32.mxu0 %v14_v9  ;;  %296 = vmatprep.mubr.f32.mxu1 %v22_v10  ;;  %v332_v22 = vpack.c.bf16 %v43_v21, %v42_v20  ;;  %v336_v25 = vpack.c.bf16 %v45_v24, %v44_v23  ;;  %v15_v26 = vld [vmem:[%s540_s0 + $0x8] sm:$0xff]  ;;  %v16_v28 = vld [vmem:[%s540_s0 + $0x10] sm:$0xff]  ;;  %v17_v30 = vld [vmem:[%s540_s0 + $0x18] sm:$0xff] }
   0x8   :  { %v23_v27 = vld [vmem:[%s540_s0 + $0x48] sm:$0xff]  ;;  %v24_v29 = vld [vmem:[%s540_s0 + $0x50] sm:$0xff]  ;;  %v25_v31 = vld [vmem:[%s540_s0 + $0x58] sm:$0xff] }
   0x9   :  { %315 = vmatpush3.bf16.msra.mxu0 %v312_v5  ;;  %349 = vmatpush3.bf16.msra.mxu1 %v312_v5  ;;  %v18_v32 = vld [vmem:[%s540_s0 + $0x20] sm:$0xff]  ;;  %v19_v34 = vld [vmem:[%s540_s0 + $0x28] sm:$0xff]  ;;  %v20_v36 = vld [vmem:[%s540_s0 + $0x30] sm:$0xff] }
   0xa   :  { %317 = vmatprep.subr.bf16.mxu0 %v316_v8  ;;  %342 = vmatprep.subr.bf16.mxu1 %v316_v8  ;;  %v26_v33 = vld [vmem:[%s540_s0 + $0x60] sm:$0xff]  ;;  %v27_v35 = vld [vmem:[%s540_s0 + $0x68] sm:$0xff]  ;;  %v28_v37 = vld [vmem:[%s540_s0 + $0x70] sm:$0xff] }
   0xb   :  { %v21_v38 = vld [vmem:[%s540_s0 + $0x38] sm:$0xff]  ;;  %v219_v40 = vld [vmem:[%s541_s2] ss:$0 sm:$0xff] }
   0xc   :  { %v29_v39 = vld [vmem:[%s540_s0 + $0x78] sm:$0xff] }
   0xd   :  { %319 = vmatpush3.bf16.msra.mxu0 %v316_v8  ;;  %350 = vmatpush3.bf16.msra.mxu1 %v316_v8 }
   0xe   :  { %321 = vmatprep.subr.bf16.mxu0 %v320_v13  ;;  %343 = vmatprep.subr.bf16.mxu1 %v320_v13 }
  0x11   :  { %323 = vmatpush3.bf16.msra.mxu0 %v320_v13  ;;  %351 = vmatpush3.bf16.msra.mxu1 %v320_v13 }
  0x12   :  { %325 = vmatprep.subr.bf16.mxu0 %v324_v16  ;;  %344 = vmatprep.subr.bf16.mxu1 %v324_v16 }
  0x15   :  { %327 = vmatpush3.bf16.msra.mxu0 %v324_v16  ;;  %352 = vmatpush3.bf16.msra.mxu1 %v324_v16 }
  0x16   :  { %329 = vmatprep.subr.bf16.mxu0 %v328_v19  ;;  %345 = vmatprep.subr.bf16.mxu1 %v328_v19 }
  0x19   :  { %331 = vmatpush3.bf16.msra.mxu0 %v328_v19  ;;  %353 = vmatpush3.bf16.msra.mxu1 %v328_v19 }
  0x1a   :  { %333 = vmatprep.subr.bf16.mxu0 %v332_v22  ;;  %346 = vmatprep.subr.bf16.mxu1 %v332_v22 }
  0x1d   :  { %335 = vmatpush3.bf16.msra.mxu0 %v332_v22  ;;  %354 = vmatpush3.bf16.msra.mxu1 %v332_v22 }
  0x1e   :  { %337 = vmatprep.subr.bf16.mxu0 %v336_v25  ;;  %347 = vmatprep.subr.bf16.mxu1 %v336_v25 }
  0x21   :  { %339 = vmatpush3.bf16.msra.mxu0 %v336_v25  ;;  %355 = vmatpush3.bf16.msra.mxu1 %v336_v25 }
  0x24   :  { %285 = vmatmul.mubr.f32.vlgmr.msra.gmra.mrb[0].mxu0 %v15_v26  ;;  %297 = vmatmul.mubr.f32.vlgmr.msra.gmra.mrb[0].mxu1 %v23_v27 }
  0x25   :  { %287 = vmatprep.mubr.f32.mxu0 %v16_v28  ;;  %299 = vmatprep.mubr.f32.mxu1 %v24_v29 }
  0x28   :  { %288 = vmatmul.mubr.f32.gmra.mrb[2].mxu0 %v17_v30  ;;  %300 = vmatmul.mubr.f32.gmra.mrb[2].mxu1 %v25_v31 }
  0x29   :  { %290 = vmatprep.mubr.f32.mxu0 %v18_v32  ;;  %302 = vmatprep.mubr.f32.mxu1 %v26_v33 }
  0x2c   :  { %291 = vmatmul.mubr.f32.gmra.mrb[4].mxu0 %v19_v34  ;;  %303 = vmatmul.mubr.f32.gmra.mrb[4].mxu1 %v27_v35 }
  0x2d   :  { %293 = vmatprep.mubr.f32.mxu0 %v20_v36  ;;  %305 = vmatprep.mubr.f32.mxu1 %v28_v37 }
  0x30   :  { %294 = vmatmul.mubr.f32.gmra.mrb[6].mxu0 %v21_v38  ;;  %306 = vmatmul.mubr.f32.gmra.mrb[6].mxu1 %v29_v39 }
  0xf7   :  { %v286_v41 = vpop.f32.mrb[0].mxu0  ;;  %v298_v42 = vpop.f32.mrb[0].mxu1 }
  0xf8   :  { %v125_v43 = vadd.f32 %v286_v41, %v219_v40  ;;  %v165_v44 = vadd.f32 %v298_v42, %v219_v40  ;;  %v119_v45 = vpop.f32.mrb[1].mxu0  ;;  %v159_v46 = vpop.f32.mrb[1].mxu1 }
  0xf9   :  { %v120_v47 = vadd.f32 %v219_v40, %v119_v45  ;;  %v160_v48 = vadd.f32 %v219_v40, %v159_v46 }
  0xfa   :  { %200 = vst.msk [vmem:[%s542_s3 + $0x8] sm:$0xff] %vm198_vm0, %v125_v43  ;;  %208 = vst.msk [vmem:[%s542_s3 + $0x48] sm:$0xff] %vm198_vm0, %v165_v44 }
  0xfb   :  { %199 = vst.msk [vmem:[%s542_s3] sm:$0xff] %vm198_vm0, %v120_v47  ;;  %207 = vst.msk [vmem:[%s542_s3 + $0x40] sm:$0xff] %vm198_vm0, %v160_v48  ;;  %v289_v49 = vpop.f32.mrb[2].mxu0  ;;  %v301_v50 = vpop.f32.mrb[2].mxu1 }
  0xfc   :  { %v135_v51 = vadd.f32 %v289_v49, %v219_v40  ;;  %v175_v52 = vadd.f32 %v301_v50, %v219_v40  ;;  %v129_v53 = vpop.f32.mrb[3].mxu0  ;;  %v169_v54 = vpop.f32.mrb[3].mxu1 }
  0xfd   :  { %v130_v55 = vadd.f32 %v219_v40, %v129_v53  ;;  %v170_v56 = vadd.f32 %v219_v40, %v169_v54 }
  0xfe   :  { %202 = vst.msk [vmem:[%s542_s3 + $0x18] sm:$0xff] %vm198_vm0, %v135_v51  ;;  %210 = vst.msk [vmem:[%s542_s3 + $0x58] sm:$0xff] %vm198_vm0, %v175_v52 }
  0xff   :  { %201 = vst.msk [vmem:[%s542_s3 + $0x10] sm:$0xff] %vm198_vm0, %v130_v55  ;;  %209 = vst.msk [vmem:[%s542_s3 + $0x50] sm:$0xff] %vm198_vm0, %v170_v56  ;;  %v292_v57 = vpop.f32.mrb[4].mxu0  ;;  %v304_v58 = vpop.f32.mrb[4].mxu1 }
 0x100   :  { %v145_v59 = vadd.f32 %v292_v57, %v219_v40  ;;  %v185_v60 = vadd.f32 %v304_v58, %v219_v40  ;;  %v139_v61 = vpop.f32.mrb[5].mxu0  ;;  %v179_v62 = vpop.f32.mrb[5].mxu1 }
 0x101   :  { %v140_v63 = vadd.f32 %v219_v40, %v139_v61  ;;  %v180_v0 = vadd.f32 %v219_v40, %v179_v62 }
 0x102   :  { %204 = vst.msk [vmem:[%s542_s3 + $0x28] sm:$0xff] %vm198_vm0, %v145_v59  ;;  %212 = vst.msk [vmem:[%s542_s3 + $0x68] sm:$0xff] %vm198_vm0, %v185_v60 }
 0x103   :  { %203 = vst.msk [vmem:[%s542_s3 + $0x20] sm:$0xff] %vm198_vm0, %v140_v63  ;;  %211 = vst.msk [vmem:[%s542_s3 + $0x60] sm:$0xff] %vm198_vm0, %v180_v0  ;;  %v295_v1 = vpop.f32.mrb[6].mxu0  ;;  %v307_v2 = vpop.f32.mrb[6].mxu1 }
 0x104   :  { %v155_v3 = vadd.f32 %v295_v1, %v219_v40  ;;  %v195_v4 = vadd.f32 %v307_v2, %v219_v40  ;;  %v149_v5 = vpop.f32.mrb[7].mxu0  ;;  %v189_v6 = vpop.f32.mrb[7].mxu1 }
 0x105   :  { %v150_v7 = vadd.f32 %v219_v40, %v149_v5  ;;  %v190_v8 = vadd.f32 %v219_v40, %v189_v6 }
 0x106   :  { %206 = vst.msk [vmem:[%s542_s3 + $0x38] sm:$0xff] %vm198_vm0, %v155_v3  ;;  %214 = vst.msk [vmem:[%s542_s3 + $0x78] sm:$0xff] %vm198_vm0, %v195_v4 }
 0x107   :  { %205 = vst.msk [vmem:[%s542_s3 + $0x30] sm:$0xff] %vm198_vm0, %v150_v7  ;;  %213 = vst.msk [vmem:[%s542_s3 + $0x70] sm:$0xff] %vm198_vm0, %v190_v8 }

// kernel: asap_diffusion_net.5
= control target key start
LH: loop header
LB: loop body
LE: loop exit
PB: predicated region body
PF: predicated region fallthrough
CT: control target
= control target key end

     0   :  { %s3124_s29 = smov 0   ;;  %s3702_s0 = inlined_call_operand.vmem [shape: f32[2,64,128], index: 0, kind: input, shape index: {}]   ;;  %s3703_s1 = inlined_call_operand.vmem [shape: f32[2,16,1], index: 1, kind: input, shape index: {}]   ;;  %s3704_s2 = inlined_call_operand.vmem [shape: f32[2,256,16], index: 2, kind: input, shape index: {}]   ;;  %s3705_s3 = inlined_call_operand.vmem [shape: f32[1,128], index: 3, kind: input, shape index: {}]   ;;  %s3706_s4 = inlined_call_operand.vmem [shape: f32[128,128], index: 4, kind: input, shape index: {}]   ;;  %s3707_s5 = inlined_call_operand.vmem [shape: f32[128,128], index: 5, kind: input, shape index: {}]   ;;  %s3708_s6 = inlined_call_operand.vmem [shape: f32[128,128], index: 6, kind: input, shape index: {}]   ;;  %s3709_s7 = inlined_call_operand.vmem [shape: f32[128,128], index: 7, kind: input, shape index: {}]   ;;  %s3710_s8 = inlined_call_operand.vmem [shape: f32[128,128], index: 8, kind: input, shape index: {}]   ;;  %s3711_s9 = inlined_call_operand.vmem [shape: f32[1,128], index: 9, kind: input, shape index: {}]   ;;  %s3712_s10 = inlined_call_operand.vmem [shape: f32[128,128], index: 10, kind: input, shape index: {}]   ;;  %s3713_s11 = inlined_call_operand.vmem [shape: f32[1,128], index: 11, kind: input, shape index: {}]   ;;  %s3714_s12 = inlined_call_operand.vmem [shape: f32[128,128], index: 12, kind: input, shape index: {}]   ;;  %s3715_s13 = inlined_call_operand.vmem [shape: f32[1,128], index: 13, kind: input, shape index: {}]   ;;  %s3716_s14 = inlined_call_operand.vmem [shape: f32[2,64,128], index: 14, kind: output, shape index: {}]  }
   0x1 LB: > { %s2073_s30 = sadd.s32 4294967295, %s3046_s29   ;;  %p2077_p0 = scmp.ge.s32.totalorder %s3046_s29, 1  ;;  %s3046_s29 = sphi %s3124_s29, %s24_s29  }
   0x2   : > { %p432_p1 = scmp.lt.s32.totalorder %s3046_s29, 3 }
   0x4   : > { %p433_p2 = pnand %p2077_p0, %p432_p1 }
   0x5   : > { %p488_p3 = scmp.lt.s32.totalorder (!%p433_p2), %s2073_s30, 1  ;;  %v3048_v11 = vmov (!%p433_p2), 0   ;;  %vm582_vm0 = vcmask (!%p433_p2), 523264   ;;  %vm692_vm1 = vcmask (!%p433_p2), 130048   ;;  %v950_v28 = vld [vmem:[%s3706_s4] sm:$0xff] (!%p433_p2)  ;;  %v951_v29 = vld [vmem:[%s3706_s4 + $0x8] sm:$0xff] (!%p433_p2)  ;;  %v679_v40 = vlaneseq (!%p433_p2) }
   0x6   : > { %436 = sbr.rel (%p433_p2) target bundleno = 1546 (0x60a), region = 76  ;;  %3010 = vset.pattern.permute.xlu1 (!%p433_p2), %v3048_v11  ;;  %v2752_v30 = vpack.c.bf16 (!%p433_p2), %v951_v29, %v950_v28  ;;  %v952_v31 = vld [vmem:[%s3706_s4 + $0x10] sm:$0xff] (!%p433_p2)  ;;  %v953_v32 = vld [vmem:[%s3706_s4 + $0x18] sm:$0xff] (!%p433_p2)  ;;  %v954_v34 = vld [vmem:[%s3706_s4 + $0x20] sm:$0xff] (!%p433_p2) }
   0x7   : > { %v2756_v33 = vpack.c.bf16 (!%p433_p2), %v953_v32, %v952_v31  ;;  %v955_v35 = vld [vmem:[%s3706_s4 + $0x28] sm:$0xff] (!%p433_p2)  ;;  %v956_v37 = vld [vmem:[%s3706_s4 + $0x30] sm:$0xff] (!%p433_p2)  ;;  %v957_v38 = vld [vmem:[%s3706_s4 + $0x38] sm:$0xff] (!%p433_p2)  ;;  %v680_v41 = vshrl.u32 (!%p433_p2), %v679_v40, 7 }
   0x8   : > { %2753 = vmatprep.subr.bf16.mxu0 (!%p433_p2), %v2752_v30  ;;  %v2760_v36 = vpack.c.bf16 (!%p433_p2), %v955_v35, %v954_v34  ;;  %v2764_v39 = vpack.c.bf16 (!%p433_p2), %v957_v38, %v956_v37  ;;  %v666_v42 = vld [vmem:[%s3705_s3] sm:$0x1] (!%p433_p2)  ;;  %v1337_v58 = vld [vmem:[%s3709_s7 + $0x8] sm:$0xff] (!%p433_p2)  ;;  %v1338_v62 = vld [vmem:[%s3709_s7 + $0x10] sm:$0xff] (!%p433_p2) }
   0x9   : > { %2755 = vmatpush3.bf16.msra.mxu0 (!%p433_p2), %v2752_v30  ;;  %v667_v44 = vand.u32 (!%p433_p2), 2147483647, %v666_v42  ;;  %v681_v45 = vsub.s32 (!%p433_p2), 0, %v680_v41  ;;  %v1336_v57 = vld [vmem:[%s3709_s7] sm:$0xff] (!%p433_p2)  ;;  %v1339_v63 = vld [vmem:[%s3709_s7 + $0x18] sm:$0xff] (!%p433_p2)  ;;  %v1349_v32 = vld [vmem:[%s3709_s7 + $0x68] sm:$0xff] (!%p433_p2) }
   0xa   : > { %2757 = vmatprep.subr.bf16.mxu0 (!%p433_p2), %v2756_v33  ;;  %v2816_v61 = vpack.c.bf16 (!%p433_p2), %v1337_v58, %v1336_v57  ;;  %v1348_v31 = vld [vmem:[%s3709_s7 + $0x60] sm:$0xff] (!%p433_p2)  ;;  %v1351_v37 = vld [vmem:[%s3709_s7 + $0x78] sm:$0xff] (!%p433_p2)  ;;  %v963_v57 = vld [vmem:[%s3706_s4 + $0x68] sm:$0xff] (!%p433_p2) }
   0xb   : > { %v682_v46 = vrot.slane (!%p433_p2), %v667_v44, %v681_v45  ;;  %v2840_v35 = vpack.c.bf16 (!%p433_p2), %v1349_v32, %v1348_v31  ;;  %v1119_v31 = vld [vmem:[%s3707_s5 + $0x40] sm:$0xff] (!%p433_p2)  ;;  %v1120_v32 = vld [vmem:[%s3707_s5 + $0x48] sm:$0xff] (!%p433_p2) }
   0xd   : > { %s3718_s30 = smov (!%p488_p3, %s2073_s30), 1  ;;  %2759 = vmatpush3.bf16.msra.mxu0 %v2756_v33 }
   0xe   : > { %s2119_s15 = sshll.u32 %s3718_s30, 8  ;;  %s2117_s16 = sshll.u32 %s3718_s30, 6  ;;  %2761 = vmatprep.subr.bf16.mxu0 %v2760_v36 }
   0xf   : > { %s3139_s19 = scalar_lea.vmem %s3704_s2, %s2119_s15  ;;  %s3146_s22 = scalar_lea.vmem %s3702_s0, %s2117_s16 }
  0x10   : > { %v518_v0 = vld [vmem:[%s3139_s19] sm:$0xff]  ;;  %v519_v1 = vld [vmem:[%s3139_s19 + $0x8] sm:$0xff]  ;;  %v3157_v4 = vld [vmem:[%s3146_s22 + $0x10] sm:$0xff]  ;;  %s2118_s23 = sshll.u32 %s3718_s30, 4 }
  0x11   : > { %550 = vxpose.xlu0.b32.start [1/8] (short) (narrow) %v518_v0, 16  ;;  %v3151_v2 = vld [vmem:[%s3146_s22] sm:$0xff]  ;;  %v3154_v3 = vld [vmem:[%s3146_s22 + $0x8] sm:$0xff]  ;;  %v3160_v5 = vld [vmem:[%s3146_s22 + $0x18] sm:$0xff]  ;;  %s497_s26 = scalar_lea.vmem %s3703_s1, %s2118_s23  ;;  %2763 = vmatpush3.bf16.msra.mxu0 %v2760_v36 }
  0x12   : > { %v2732_v6 = vpack.c.bf16 %v3154_v3, %v3151_v2  ;;  %v2736_v7 = vpack.c.bf16 %v3160_v5, %v3157_v4  ;;  %v3167_v8 = vld [vmem:[%s3146_s22 + $0x20] sm:$0xff]  ;;  %v3170_v9 = vld [vmem:[%s3146_s22 + $0x28] sm:$0xff]  ;;  %v520_v10 = vld [vmem:[%s3139_s19 + $0x10] sm:$0xff]  ;;  %2765 = vmatprep.subr.bf16.mxu0 %v2764_v39 }
  0x13   : > { %v2740_v12 = vpack.c.bf16 %v3170_v9, %v3167_v8  ;;  %v516_v13 = vld [vmem:[%s497_s26] sm:$0xff]  ;;  %v517_v14 = vld [vmem:[%s497_s26 + $0x8] sm:$0xff]  ;;  %v3180_v15 = vld [vmem:[%s3146_s22 + $0x30] sm:$0xff]  ;;  %s3681_s26 = scalar_lea.vmem %s3716_s14, %s2117_s16 }
  0x14   : > { %2733 = vmatprep.subr.bf16.mxu1 %v2732_v6  ;;  %v3183_v16 = vld [vmem:[%s3146_s22 + $0x38] sm:$0xff]  ;;  %v664_v17 = vsub.f32 0.0, %v516_v13  ;;  %v665_v19 = vsub.f32 0.0, %v517_v14  ;;  %v522_v21 = vld [vmem:[%s3139_s19 + $0x20] sm:$0xff]  ;;  %v523_v22 = vld [vmem:[%s3139_s19 + $0x28] sm:$0xff] }
  0x15   : > { %551 = vxpose.xlu0.b32.cont [2/8] (short) (narrow) %v519_v1, 16  ;;  %2735 = vmatpush3.bf16.msra.mxu1 %v2732_v6  ;;  %v521_v18 = vld [vmem:[%s3139_s19 + $0x18] sm:$0xff]  ;;  %v2744_v20 = vpack.c.bf16 %v3183_v16, %v3180_v15  ;;  %v524_v23 = vld [vmem:[%s3139_s19 + $0x30] sm:$0xff]  ;;  %v526_v27 = vld [vmem:[%s3139_s19 + $0x40] sm:$0xff]  ;;  %v2820_v6 = vpack.c.bf16 %v1339_v63, %v1338_v62 }
  0x16   : > { %2737 = vmatprep.subr.bf16.mxu1 %v2736_v7  ;;  %670 = vperm.xlu1 %3010, %v664_v17   ;;  %v525_v24 = vld [vmem:[%s3139_s19 + $0x38] sm:$0xff]  ;;  %v527_v0 = vld [vmem:[%s3139_s19 + $0x48] sm:$0xff]  ;;  %v528_v1 = vld [vmem:[%s3139_s19 + $0x50] sm:$0xff] }
  0x17   : > { %2767 = vmatpush3.bf16.msra.mxu0 %v2764_v39  ;;  %v1342_v14 = vld [vmem:[%s3709_s7 + $0x30] sm:$0xff]  ;;  %v1343_v17 = vld [vmem:[%s3709_s7 + $0x38] sm:$0xff]  ;;  %v535_v28 = vld [vmem:[%s3139_s19 + $0x88] sm:$0xff] }
  0x18   : > { %v536_v29 = vld [vmem:[%s3139_s19 + $0x90] sm:$0xff]  ;;  %v537_v33 = vld [vmem:[%s3139_s19 + $0x98] sm:$0xff]  ;;  %v538_v34 = vld [vmem:[%s3139_s19 + $0xa0] sm:$0xff] }
  0x19   : > { %552 = vxpose.xlu0.b32.cont [3/8] (short) (narrow) %v520_v10, 16  ;;  %2739 = vmatpush3.bf16.msra.mxu1 %v2736_v7  ;;  %v1340_v7 = vld [vmem:[%s3709_s7 + $0x20] sm:$0xff]  ;;  %v1341_v10 = vld [vmem:[%s3709_s7 + $0x28] sm:$0xff]  ;;  %v1350_v36 = vld [vmem:[%s3709_s7 + $0x70] sm:$0xff] }
  0x1a   : > { %2741 = vmatprep.subr.bf16.mxu1 %v2740_v12  ;;  %675 = vperm.xlu1 %3010, %v665_v19   ;;  %v2824_v13 = vpack.c.bf16 %v1341_v10, %v1340_v7  ;;  %v532_v19 = vld [vmem:[%s3139_s19 + $0x70] sm:$0xff]  ;;  %v539_v38 = vld [vmem:[%s3139_s19 + $0xa8] sm:$0xff]  ;;  %v2844_v40 = vpack.c.bf16 %v1351_v37, %v1350_v36  ;;  %v541_v41 = vld [vmem:[%s3139_s19 + $0xb8] sm:$0xff] }
  0x1b   : > { %v540_v39 = vld [vmem:[%s3139_s19 + $0xb0] sm:$0xff]  ;;  %v542_v42 = vld [vmem:[%s3139_s19 + $0xc0] sm:$0xff]  ;;  %v545_v45 = vld [vmem:[%s3139_s19 + $0xd8] sm:$0xff] }
  0x1c   : > { %v544_v44 = vld [vmem:[%s3139_s19 + $0xd0] sm:$0xff]  ;;  %v1111_v62 = vld [vmem:[%s3707_s5] sm:$0xff]  ;;  %v1112_v63 = vld [vmem:[%s3707_s5 + $0x8] sm:$0xff] }
  0x1d   : > { %553 = vxpose.xlu0.b32.cont [4/8] (short) (narrow) %v521_v18, 16  ;;  %2743 = vmatpush3.bf16.msra.mxu1 %v2740_v12  ;;  %v530_v12 = vld [vmem:[%s3139_s19 + $0x60] sm:$0xff]  ;;  %v531_v18 = vld [vmem:[%s3139_s19 + $0x68] sm:$0xff]  ;;  %v1121_v36 = vld [vmem:[%s3707_s5 + $0x50] sm:$0xff] }
  0x1e   : > { %2745 = vmatprep.subr.bf16.mxu1 %v2744_v20  ;;  %v1122_v37 = vld [vmem:[%s3707_s5 + $0x58] sm:$0xff] }
  0x21   : > { %554 = vxpose.xlu0.b32.cont [5/8] (short) (narrow) %v522_v21, 16  ;;  %2747 = vmatpush3.bf16.msra.mxu1 %v2744_v20  ;;  %v2828_v20 = vpack.c.bf16 %v1343_v17, %v1342_v14  ;;  %v1344_v21 = vld [vmem:[%s3709_s7 + $0x40] sm:$0xff]  ;;  %v1113_v17 = vld [vmem:[%s3707_s5 + $0x10] sm:$0xff] }
  0x25   : > { %555 = vxpose.xlu0.b32.cont [6/8] (short) (narrow) %v523_v22, 16  ;;  %v1345_v22 = vld [vmem:[%s3709_s7 + $0x48] sm:$0xff] }
  0x29   : > { %556 = vxpose.xlu0.b32.cont [7/8] (short) (narrow) %v524_v23, 16  ;;  %v533_v23 = vld [vmem:[%s3139_s19 + $0x78] sm:$0xff] }
  0x2d   : > { %557 = vxpose.xlu0.b32.end [8/8] (short) (narrow) %v525_v24, 16  ;;  %v534_v24 = vld [vmem:[%s3139_s19 + $0x80] sm:$0xff] }
  0x56   : > { %3011 = vset.pattern.permute.xlu0 %v3048_v11  ;;  %v529_v11 = vld [vmem:[%s3139_s19 + $0x58] sm:$0xff] }
  0x91   : > { %v566_v25 = vpop.trf.xlu0 }
  0x92   : > { %2357 = vmatprep.mubr.msk.f32.mxu1 %vm582_vm0, %v566_v25  ;;  %v2832_v25 = vpack.c.bf16 %v1345_v22, %v1344_v21  ;;  %v1115_v22 = vld [vmem:[%s3707_s5 + $0x20] sm:$0xff] }
  0x95   : > { %v567_v26 = vpop.trf.xlu0  ;;  %v671_v43 = vpop.permute.xlu1 %670 }
  0x96   : > { %2358 = vmatmul.mubr.msk.f32.vlgmr.msra.gmra.mrb[0].mxu1 %vm582_vm0, %v567_v26  ;;  %v684_v49 = vmul.f32 %v682_v46, %v671_v43  ;;  %v1346_v26 = vld [vmem:[%s3709_s7 + $0x50] sm:$0xff]  ;;  %v543_v43 = vld [vmem:[%s3139_s19 + $0xc8] sm:$0xff] }
  0x97   : > { %2364 = vmatprep.mubr.msk.f32.mxu1 %vm692_vm1, %v526_v27  ;;  %v1347_v27 = vld [vmem:[%s3709_s7 + $0x58] sm:$0xff] }
  0x98   : > { %v686_v51 = vmul.f32 1.442695, %v684_v49  ;;  %v2836_v30 = vpack.c.bf16 %v1347_v27, %v1346_v26  ;;  %v549_v49 = vld [vmem:[%s3139_s19 + $0xf8] sm:$0xff]  ;;  %v1117_v26 = vld [vmem:[%s3707_s5 + $0x30] sm:$0xff] }
  0x99   : > { %v676_v47 = vpop.permute.xlu1 %675  ;;  %v1118_v27 = vld [vmem:[%s3707_s5 + $0x38] sm:$0xff] }
  0x9a   : > { %v685_v48 = vmul.f32 %v682_v46, %v676_v47  ;;  %v546_v46 = vld [vmem:[%s3139_s19 + $0xe0] sm:$0xff]  ;;  %v547_v47 = vld [vmem:[%s3139_s19 + $0xe8] sm:$0xff] }
  0x9c   : > { %v688_v50 = vmul.f32 1.442695, %v685_v48  ;;  %v548_v48 = vld [vmem:[%s3139_s19 + $0xf0] sm:$0xff] }
  0x9e   : > { %3012 = vpow2.f32 %v688_v50  ;;  %v958_v50 = vld [vmem:[%s3706_s4 + $0x40] sm:$0xff] }
  0x9f   : > { %3014 = vpow2.f32 %v686_v51  ;;  %v959_v51 = vld [vmem:[%s3706_s4 + $0x48] sm:$0xff] }
  0xa8   : > { %v3013_v52 = vpop.eup %3012 }
  0xa9   : > { %v3015_v54 = vpop.eup %3014 }
 0x169   : > { %v2359_v53 = vpop.f32.mrb[0].mxu1 }
 0x16a   : > { %v691_v55 = vmul.f32 %v3013_v52, %v2359_v53  ;;  %v655_v56 = vpop.f32.mrb[1].mxu1  ;;  %v2768_v52 = vpack.c.bf16 %v959_v51, %v958_v50  ;;  %v960_v53 = vld [vmem:[%s3706_s4 + $0x50] sm:$0xff] }
 0x16b   : > { %v690_v59 = vmul.f32 %v3015_v54, %v655_v56  ;;  %v961_v54 = vld [vmem:[%s3706_s4 + $0x58] sm:$0xff]  ;;  %v962_v56 = vld [vmem:[%s3706_s4 + $0x60] sm:$0xff] }
 0x16c   : > { %2769 = vmatprep.subr.bf16.mxu0 %v2768_v52  ;;  %v2776_v58 = vpack.c.bf16 %v963_v57, %v962_v56  ;;  %v1322_v56 = vld [vmem:[%s3708_s6 + $0x10] sm:$0xff]  ;;  %v1323_v57 = vld [vmem:[%s3708_s6 + $0x18] sm:$0xff] }
 0x16d   : > { %v2748_v60 = vpack.c.bf16 %v691_v55, %v690_v59  ;;  %2771 = vmatpush3.bf16.msra.mxu0 %v2768_v52  ;;  %v2772_v55 = vpack.c.bf16 %v961_v54, %v960_v53  ;;  %v964_v59 = vld [vmem:[%s3706_s4 + $0x70] sm:$0xff]  ;;  %v1320_v53 = vld [vmem:[%s3708_s6] sm:$0xff]  ;;  %v1321_v54 = vld [vmem:[%s3708_s6 + $0x8] sm:$0xff] }
 0x16f   : > { %2749 = vmatprep.subr.bf16.mxu1 %v2748_v60  ;;  %2773 = vmatprep.subr.bf16.mxu0 %v2772_v55 }
 0x170   : > { %2751 = vmatpush3.bf16.msra.mxu1 %v2748_v60  ;;  %v965_v60 = vld [vmem:[%s3706_s4 + $0x78] sm:$0xff] }
 0x171   : > { %2817 = vmatprep.subr.bf16.mxu1 %v2816_v61  ;;  %2775 = vmatpush3.bf16.msra.mxu0 %v2772_v55  ;;  %v2848_v55 = vpack.c.bf16 %v1321_v54, %v1320_v53  ;;  %v1714_v53 = vld [vmem:[%s3712_s10] sm:$0xff]  ;;  %v1715_v54 = vld [vmem:[%s3712_s10 + $0x8] sm:$0xff] }
 0x172   : > { %2777 = vmatprep.subr.bf16.mxu0 %v2776_v58 }
 0x173   : > { %2365 = vmatmul.mubr.msk.f32.vlgmr.msra.gmra.mrb[2].mxu1 %vm692_vm1, %v527_v0  ;;  %v2784_v0 = vpack.c.bf16 %v1112_v63, %v1111_v62  ;;  %v1326_v62 = vld [vmem:[%s3708_s6 + $0x30] sm:$0xff]  ;;  %v1327_v63 = vld [vmem:[%s3708_s6 + $0x38] sm:$0xff] }
 0x174   : > { %2367 = vmatprep.mubr.msk.f32.mxu1 %vm692_vm1, %v528_v1  ;;  %2819 = vmatpush3.bf16.msra.mxu1 %v2816_v61  ;;  %v2780_v61 = vpack.c.bf16 %v965_v60, %v964_v59  ;;  %v1324_v59 = vld [vmem:[%s3708_s6 + $0x20] sm:$0xff]  ;;  %v1325_v60 = vld [vmem:[%s3708_s6 + $0x28] sm:$0xff] }
 0x175   : > { %2821 = vmatprep.subr.bf16.mxu1 %v2820_v6  ;;  %2779 = vmatpush3.bf16.msra.mxu0 %v2776_v58  ;;  %v2852_v58 = vpack.c.bf16 %v1323_v57, %v1322_v56  ;;  %v2912_v56 = vpack.c.bf16 %v1715_v54, %v1714_v53  ;;  %v1717_v57 = vld [vmem:[%s3712_s10 + $0x18] sm:$0xff] }
 0x176   : > { %2781 = vmatprep.subr.bf16.mxu0 %v2780_v61 }
 0x177   : > { %2368 = vmatmul.mubr.msk.f32.gmra.mrb[4].mxu1 %vm692_vm1, %v529_v11 }
 0x178   : > { %2370 = vmatprep.mubr.msk.f32.mxu1 %vm692_vm1, %v530_v12  ;;  %2823 = vmatpush3.bf16.msra.mxu1 %v2820_v6 }
 0x179   : > { %2825 = vmatprep.subr.bf16.mxu1 %v2824_v13  ;;  %2783 = vmatpush3.bf16.msra.mxu0 %v2780_v61  ;;  %v2856_v61 = vpack.c.bf16 %v1325_v60, %v1324_v59  ;;  %v1718_v59 = vld [vmem:[%s3712_s10 + $0x20] sm:$0xff]  ;;  %v1719_v60 = vld [vmem:[%s3712_s10 + $0x28] sm:$0xff] }
 0x17a   : > { %2785 = vmatprep.subr.bf16.mxu0 %v2784_v0 }
 0x17b   : > { %2371 = vmatmul.mubr.msk.f32.gmra.mrb[6].mxu1 %vm692_vm1, %v531_v18  ;;  %v1114_v18 = vld [vmem:[%s3707_s5 + $0x18] sm:$0xff] }
 0x17c   : > { %2373 = vmatprep.mubr.msk.f32.mxu1 %vm692_vm1, %v532_v19  ;;  %2827 = vmatpush3.bf16.msra.mxu1 %v2824_v13  ;;  %v2788_v21 = vpack.c.bf16 %v1114_v18, %v1113_v17  ;;  %v1334_v18 = vld [vmem:[%s3708_s6 + $0x70] sm:$0xff] }
 0x17d   : > { %2829 = vmatprep.subr.bf16.mxu1 %v2828_v20 }
 0x17f   : > { %2374 = vmatmul.mubr.msk.f32.gmra.mrb[8].mxu1 %vm692_vm1, %v533_v23  ;;  %v1116_v23 = vld [vmem:[%s3707_s5 + $0x28] sm:$0xff] }
 0x180   : > { %2376 = vmatprep.mubr.msk.f32.mxu1 %vm692_vm1, %v534_v24  ;;  %2831 = vmatpush3.bf16.msra.mxu1 %v2828_v20 }
 0x181   : > { %2833 = vmatprep.subr.bf16.mxu1 %v2832_v25 }
 0x183   : > { %2377 = vmatmul.mubr.msk.f32.gmra.mrb[10].mxu1 %vm692_vm1, %v535_v28 }
 0x184   : > { %2379 = vmatprep.mubr.msk.f32.mxu1 %vm692_vm1, %v536_v29  ;;  %2835 = vmatpush3.bf16.msra.mxu1 %v2832_v25 }
 0x185   : > { %2837 = vmatprep.subr.bf16.mxu1 %v2836_v30 }
 0x187   : > { %2380 = vmatmul.mubr.msk.f32.gmra.mrb[12].mxu1 %vm692_vm1, %v537_v33 }
 0x188   : > { %2382 = vmatprep.mubr.msk.f32.mxu1 %vm692_vm1, %v538_v34  ;;  %2839 = vmatpush3.bf16.msra.mxu1 %v2836_v30  ;;  %v2796_v30 = vpack.c.bf16 %v1118_v27, %v1117_v26  ;;  %v1564_v27 = vld [vmem:[%s3710_s8 + $0x10] sm:$0xff] }
 0x189   : > { %2841 = vmatprep.subr.bf16.mxu1 %v2840_v35 }
 0x18b   : > { %2383 = vmatmul.mubr.msk.f32.gmra.mrb[14].mxu1 %vm692_vm1, %v539_v38 }
 0x18c   : > { %2385 = vmatprep.mubr.msk.f32.mxu1 %vm692_vm1, %v540_v39  ;;  %2843 = vmatpush3.bf16.msra.mxu1 %v2840_v35  ;;  %v2800_v35 = vpack.c.bf16 %v1120_v32, %v1119_v31  ;;  %v1567_v32 = vld [vmem:[%s3710_s8 + $0x28] sm:$0xff] }
 0x18d   : > { %2845 = vmatprep.subr.bf16.mxu1 %v2844_v40 }
 0x18f   : > { %2386 = vmatmul.mubr.msk.f32.gmra.mrb[16].mxu1 %vm692_vm1, %v541_v41  ;;  %v1123_v41 = vld [vmem:[%s3707_s5 + $0x60] sm:$0xff] }
 0x190   : > { %2388 = vmatprep.mubr.msk.f32.mxu1 %vm692_vm1, %v542_v42  ;;  %2847 = vmatpush3.bf16.msra.mxu1 %v2844_v40  ;;  %v2804_v40 = vpack.c.bf16 %v1122_v37, %v1121_v36  ;;  %v1124_v42 = vld [vmem:[%s3707_s5 + $0x68] sm:$0xff] }
 0x191   : > { %2849 = vmatprep.subr.bf16.mxu1 %v2848_v55 }
 0x193   : > { %2389 = vmatmul.mubr.msk.f32.gmra.mrb[18].mxu1 %vm692_vm1, %v543_v43 }
 0x194   : > { %2391 = vmatprep.mubr.msk.f32.mxu1 %vm692_vm1, %v544_v44 }
 0x197   : > { %2392 = vmatmul.mubr.msk.f32.gmra.mrb[20].mxu1 %vm692_vm1, %v545_v45  ;;  %v2808_v45 = vpack.c.bf16 %v1124_v42, %v1123_v41  ;;  %v1574_v41 = vld [vmem:[%s3710_s8 + $0x60] sm:$0xff]  ;;  %v1575_v42 = vld [vmem:[%s3710_s8 + $0x68] sm:$0xff] }
 0x198   : > { %2394 = vmatprep.mubr.msk.f32.mxu1 %vm692_vm1, %v546_v46  ;;  %v1125_v46 = vld [vmem:[%s3707_s5 + $0x70] sm:$0xff] }
 0x19b   : > { %2395 = vmatmul.mubr.msk.f32.gmra.mrb[22].mxu1 %vm692_vm1, %v547_v47  ;;  %v1126_v47 = vld [vmem:[%s3707_s5 + $0x78] sm:$0xff] }
 0x19c   : > { %2397 = vmatprep.mubr.msk.f32.mxu1 %vm692_vm1, %v548_v48  ;;  %v2812_v50 = vpack.c.bf16 %v1126_v47, %v1125_v46  ;;  %v1576_v46 = vld [vmem:[%s3710_s8 + $0x70] sm:$0xff]  ;;  %v1577_v47 = vld [vmem:[%s3710_s8 + $0x78] sm:$0xff] }
 0x19f   : > { %2398 = vmatmul.mubr.msk.f32.gmra.mrb[24].mxu1 %vm692_vm1, %v549_v49 }
 0x246   : > { %v2366_v1 = vpop.f32.mrb[2].mxu1 }
 0x247   : > { %v831_v6 = vpop.f32.mrb[3].mxu1 }
 0x248   : > { %2544 = vmatprep.mubr.f32.mxu1 %v831_v6  ;;  %v1329_v6 = vld [vmem:[%s3708_s6 + $0x48] sm:$0xff] }
 0x249   : > { %2545 = vmatmul.mubr.f32.vlgmr.msra.gmra.mrb[26].mxu1 %v2366_v1  ;;  %v2860_v1 = vpack.c.bf16 %v1327_v63, %v1326_v62  ;;  %v1720_v62 = vld [vmem:[%s3712_s10 + $0x30] sm:$0xff]  ;;  %v1721_v63 = vld [vmem:[%s3712_s10 + $0x38] sm:$0xff] }
 0x24a   : > { %v2369_v7 = vpop.f32.mrb[4].mxu1  ;;  %2851 = vmatpush3.bf16.msra.mxu1 %v2848_v55  ;;  %v1716_v55 = vld [vmem:[%s3712_s10 + $0x10] sm:$0xff] }
 0x24b   : > { %v841_v10 = vpop.f32.mrb[5].mxu1  ;;  %2853 = vmatprep.subr.bf16.mxu1 %v2852_v58 }
 0x24c   : > { %2547 = vmatprep.mubr.f32.mxu1 %v841_v10  ;;  %v1330_v10 = vld [vmem:[%s3708_s6 + $0x50] sm:$0xff] }
 0x24d   : > { %2548 = vmatmul.mubr.f32.gmra.mrb[28].mxu1 %v2369_v7 }
 0x24e   : > { %v2372_v11 = vpop.f32.mrb[6].mxu1  ;;  %2855 = vmatpush3.bf16.msra.mxu1 %v2852_v58  ;;  %v2916_v58 = vpack.c.bf16 %v1717_v57, %v1716_v55 }
 0x24f   : > { %v851_v12 = vpop.f32.mrb[7].mxu1  ;;  %2857 = vmatprep.subr.bf16.mxu1 %v2856_v61 }
 0x250   : > { %2550 = vmatprep.mubr.f32.mxu1 %v851_v12 }
 0x251   : > { %2551 = vmatmul.mubr.f32.gmra.mrb[30].mxu1 %v2372_v11  ;;  %v1331_v11 = vld [vmem:[%s3708_s6 + $0x58] sm:$0xff] }
 0x252   : > { %v2375_v13 = vpop.f32.mrb[8].mxu1  ;;  %2859 = vmatpush3.bf16.msra.mxu1 %v2856_v61  ;;  %v2868_v12 = vpack.c.bf16 %v1331_v11, %v1330_v10  ;;  %v2920_v61 = vpack.c.bf16 %v1719_v60, %v1718_v59  ;;  %v1724_v10 = vld [vmem:[%s3712_s10 + $0x50] sm:$0xff]  ;;  %v1725_v11 = vld [vmem:[%s3712_s10 + $0x58] sm:$0xff] }
 0x253   : > { %v861_v14 = vpop.f32.mrb[9].mxu1  ;;  %2861 = vmatprep.subr.bf16.mxu1 %v2860_v1 }
 0x254   : > { %2553 = vmatprep.mubr.f32.mxu1 %v861_v14  ;;  %v1333_v14 = vld [vmem:[%s3708_s6 + $0x68] sm:$0xff] }
 0x255   : > { %2554 = vmatmul.mubr.f32.gmra.mrb[32].mxu1 %v2375_v13  ;;  %v1332_v13 = vld [vmem:[%s3708_s6 + $0x60] sm:$0xff] }
 0x256   : > { %v3351_v19 = vpop.f32.mrb[10].mxu1  ;;  %2588 = vmatprep.mubr.f32.mxu1 %v3151_v2  ;;  %v2792_v2 = vpack.c.bf16 %v1116_v23, %v1115_v22  ;;  %2863 = vmatpush3.bf16.msra.mxu1 %v2860_v1  ;;  %v2872_v17 = vpack.c.bf16 %v1333_v14, %v1332_v13  ;;  %v1562_v23 = vld [vmem:[%s3710_s8] sm:$0xff]  ;;  %v1727_v14 = vld [vmem:[%s3712_s10 + $0x68] sm:$0xff] }
 0x257   : > { %v3354_v20 = vpop.f32.mrb[11].mxu1  ;;  %v1722_v1 = vld [vmem:[%s3712_s10 + $0x40] sm:$0xff] }
 0x258   : > { %2432 = vmatprep.mubr.f32.mxu0 %v3354_v20  ;;  %v1726_v13 = vld [vmem:[%s3712_s10 + $0x60] sm:$0xff] }
 0x259   : > { %2433 = vmatmul.mubr.f32.vlgmr.msra.gmra.mrb[0].mxu0 %v3351_v19 }
 0x25a   : > { %v3364_v24 = vpop.f32.mrb[12].mxu1  ;;  %2787 = vmatpush3.bf16.msra.mxu0 %v2784_v0  ;;  %v1328_v0 = vld [vmem:[%s3708_s6 + $0x40] sm:$0xff] }
 0x25b   : > { %v3366_v25 = vpop.f32.mrb[13].mxu1  ;;  %2789 = vmatprep.subr.bf16.mxu0 %v2788_v21  ;;  %v2864_v7 = vpack.c.bf16 %v1329_v6, %v1328_v0  ;;  %v2924_v0 = vpack.c.bf16 %v1721_v63, %v1720_v62  ;;  %v1723_v6 = vld [vmem:[%s3712_s10 + $0x48] sm:$0xff] }
 0x25c   : > { %2435 = vmatprep.mubr.f32.mxu0 %v3366_v25 }
 0x25d   : > { %2436 = vmatmul.mubr.f32.gmra.mrb[2].mxu0 %v3364_v24  ;;  %2865 = vmatprep.subr.bf16.mxu1 %v2864_v7 }
 0x25e   : > { %v3376_v28 = vpop.f32.mrb[14].mxu1  ;;  %2791 = vmatpush3.bf16.msra.mxu0 %v2788_v21  ;;  %2867 = vmatpush3.bf16.msra.mxu1 %v2864_v7  ;;  %v1335_v21 = vld [vmem:[%s3708_s6 + $0x78] sm:$0xff]  ;;  %v2928_v7 = vpack.c.bf16 %v1723_v6, %v1722_v1 }
 0x25f   : > { %v3378_v29 = vpop.f32.mrb[15].mxu1  ;;  %2793 = vmatprep.subr.bf16.mxu0 %v2792_v2  ;;  %2869 = vmatprep.subr.bf16.mxu1 %v2868_v12  ;;  %v2876_v22 = vpack.c.bf16 %v1335_v21, %v1334_v18 }
 0x260   : > { %2438 = vmatprep.mubr.f32.mxu0 %v3378_v29 }
 0x261   : > { %2439 = vmatmul.mubr.f32.gmra.mrb[4].mxu0 %v3376_v28 }
 0x262   : > { %v3388_v33 = vpop.f32.mrb[16].mxu1  ;;  %2795 = vmatpush3.bf16.msra.mxu0 %v2792_v2  ;;  %2871 = vmatpush3.bf16.msra.mxu1 %v2868_v12  ;;  %v1563_v2 = vld [vmem:[%s3710_s8 + $0x8] sm:$0xff]  ;;  %v2932_v12 = vpack.c.bf16 %v1725_v11, %v1724_v10 }
 0x263   : > { %v3390_v34 = vpop.f32.mrb[17].mxu1  ;;  %2797 = vmatprep.subr.bf16.mxu0 %v2796_v30  ;;  %2873 = vmatprep.subr.bf16.mxu1 %v2872_v17  ;;  %v2880_v26 = vpack.c.bf16 %v1563_v2, %v1562_v23 }
 0x264   : > { %2441 = vmatprep.mubr.f32.mxu0 %v3390_v34 }
 0x265   : > { %2442 = vmatmul.mubr.f32.gmra.mrb[6].mxu0 %v3388_v33 }
 0x266   : > { %v3400_v38 = vpop.f32.mrb[18].mxu1  ;;  %2799 = vmatpush3.bf16.msra.mxu0 %v2796_v30  ;;  %2875 = vmatpush3.bf16.msra.mxu1 %v2872_v17  ;;  %v1565_v30 = vld [vmem:[%s3710_s8 + $0x18] sm:$0xff]  ;;  %v2936_v17 = vpack.c.bf16 %v1727_v14, %v1726_v13 }
 0x267   : > { %v3402_v39 = vpop.f32.mrb[19].mxu1  ;;  %2801 = vmatprep.subr.bf16.mxu0 %v2800_v35  ;;  %2877 = vmatprep.subr.bf16.mxu1 %v2876_v22  ;;  %v2884_v31 = vpack.c.bf16 %v1565_v30, %v1564_v27 }
 0x268   : > { %2444 = vmatprep.mubr.f32.mxu0 %v3402_v39 }
 0x269   : > { %2445 = vmatmul.mubr.f32.gmra.mrb[8].mxu0 %v3400_v38 }
 0x26a   : > { %v3412_v43 = vpop.f32.mrb[20].mxu1  ;;  %2803 = vmatpush3.bf16.msra.mxu0 %v2800_v35  ;;  %2879 = vmatpush3.bf16.msra.mxu1 %v2876_v22 }
 0x26b   : > { %v3414_v44 = vpop.f32.mrb[21].mxu1  ;;  %2805 = vmatprep.subr.bf16.mxu0 %v2804_v40  ;;  %2881 = vmatprep.subr.bf16.mxu1 %v2880_v26 }
 0x26c   : > { %2447 = vmatprep.mubr.f32.mxu0 %v3414_v44 }
 0x26d   : > { %2448 = vmatmul.mubr.f32.gmra.mrb[10].mxu0 %v3412_v43  ;;  %2589 = vmatmul.mubr.f32.vlgmr.msra.gmra.mrb[26].mxu1 %v3154_v3  ;;  %v1566_v3 = vld [vmem:[%s3710_s8 + $0x20] sm:$0xff] }
 0x26e   : > { %v3424_v48 = vpop.f32.mrb[22].mxu1  ;;  %2807 = vmatpush3.bf16.msra.mxu0 %v2804_v40  ;;  %2883 = vmatpush3.bf16.msra.mxu1 %v2880_v26  ;;  %v2888_v35 = vpack.c.bf16 %v1567_v32, %v1566_v3 }
 0x26f   : > { %v3426_v49 = vpop.f32.mrb[23].mxu1  ;;  %2809 = vmatprep.subr.bf16.mxu0 %v2808_v45  ;;  %2591 = vmatprep.mubr.f32.mxu1 %v3157_v4  ;;  %v1568_v4 = vld [vmem:[%s3710_s8 + $0x30] sm:$0xff] }
 0x270   : > { %2450 = vmatprep.mubr.f32.mxu0 %v3426_v49  ;;  %2885 = vmatprep.subr.bf16.mxu1 %v2884_v31 }
 0x271   : > { %2451 = vmatmul.mubr.f32.gmra.mrb[12].mxu0 %v3424_v48  ;;  %2592 = vmatmul.mubr.f32.gmra.mrb[28].mxu1 %v3160_v5  ;;  %v1569_v5 = vld [vmem:[%s3710_s8 + $0x38] sm:$0xff] }
 0x272   : > { %v3430_v51 = vpop.f32.mrb[24].mxu1  ;;  %2811 = vmatpush3.bf16.msra.mxu0 %v2808_v45  ;;  %2887 = vmatpush3.bf16.msra.mxu1 %v2884_v31  ;;  %v2892_v36 = vpack.c.bf16 %v1569_v5, %v1568_v4  ;;  %v2904_v45 = vpack.c.bf16 %v1575_v42, %v1574_v41 }
 0x273   : > { %v3432_v52 = vpop.f32.mrb[25].mxu1  ;;  %2813 = vmatprep.subr.bf16.mxu0 %v2812_v50  ;;  %2594 = vmatprep.mubr.f32.mxu1 %v3167_v8  ;;  %v1570_v8 = vld [vmem:[%s3710_s8 + $0x40] sm:$0xff] }
 0x274   : > { %2453 = vmatprep.mubr.f32.mxu0 %v3432_v52  ;;  %2889 = vmatprep.subr.bf16.mxu1 %v2888_v35 }
 0x275   : > { %2454 = vmatmul.mubr.f32.gmra.mrb[14].mxu0 %v3430_v51  ;;  %2595 = vmatmul.mubr.f32.gmra.mrb[30].mxu1 %v3170_v9  ;;  %v1571_v9 = vld [vmem:[%s3710_s8 + $0x48] sm:$0xff] }
 0x276   : > { %2815 = vmatpush3.bf16.msra.mxu0 %v2812_v50  ;;  %2488 = vmatprep.mubr.f32.mxu0 %v3354_v20  ;;  %v2896_v37 = vpack.c.bf16 %v1571_v9, %v1570_v8  ;;  %v2908_v50 = vpack.c.bf16 %v1577_v47, %v1576_v46 }
 0x277   : > { %2891 = vmatpush3.bf16.msra.mxu1 %v2888_v35  ;;  %2597 = vmatprep.mubr.f32.mxu1 %v3180_v15  ;;  %v1572_v15 = vld [vmem:[%s3710_s8 + $0x50] sm:$0xff] }
 0x278   : > { %2893 = vmatprep.subr.bf16.mxu1 %v2892_v36  ;;  %2913 = vmatprep.subr.bf16.mxu0 %v2912_v56 }
 0x279   : > { %2489 = vmatmul.mubr.f32.vlgmr.msra.gmra.mrb[8].mxu0 %v3351_v19  ;;  %2598 = vmatmul.mubr.f32.gmra.mrb[32].mxu1 %v3183_v16  ;;  %v1573_v16 = vld [vmem:[%s3710_s8 + $0x58] sm:$0xff] }
 0x27a   : > { %2491 = vmatprep.mubr.f32.mxu0 %v3366_v25  ;;  %v2900_v40 = vpack.c.bf16 %v1573_v16, %v1572_v15  ;;  %2915 = vmatpush3.bf16.msra.mxu0 %v2912_v56 }
 0x27b   : > { %2895 = vmatpush3.bf16.msra.mxu1 %v2892_v36  ;;  %2917 = vmatprep.subr.bf16.mxu0 %v2916_v58 }
 0x27c   : > { %2897 = vmatprep.subr.bf16.mxu1 %v2896_v37 }
 0x27d   : > { %2492 = vmatmul.mubr.f32.gmra.mrb[10].mxu0 %v3364_v24 }
 0x27e   : > { %2494 = vmatprep.mubr.f32.mxu0 %v3378_v29  ;;  %2919 = vmatpush3.bf16.msra.mxu0 %v2916_v58 }
 0x27f   : > { %2899 = vmatpush3.bf16.msra.mxu1 %v2896_v37  ;;  %2921 = vmatprep.subr.bf16.mxu0 %v2920_v61 }
 0x280   : > { %2901 = vmatprep.subr.bf16.mxu1 %v2900_v40 }
 0x281   : > { %2495 = vmatmul.mubr.f32.gmra.mrb[12].mxu0 %v3376_v28 }
 0x282   : > { %2497 = vmatprep.mubr.f32.mxu0 %v3390_v34  ;;  %2923 = vmatpush3.bf16.msra.mxu0 %v2920_v61 }
 0x283   : > { %2903 = vmatpush3.bf16.msra.mxu1 %v2900_v40  ;;  %2925 = vmatprep.subr.bf16.mxu0 %v2924_v0 }
 0x284   : > { %2905 = vmatprep.subr.bf16.mxu1 %v2904_v45 }
 0x285   : > { %2498 = vmatmul.mubr.f32.gmra.mrb[14].mxu0 %v3388_v33 }
 0x286   : > { %2500 = vmatprep.mubr.f32.mxu0 %v3402_v39  ;;  %2927 = vmatpush3.bf16.msra.mxu0 %v2924_v0 }
 0x287   : > { %2907 = vmatpush3.bf16.msra.mxu1 %v2904_v45  ;;  %2929 = vmatprep.subr.bf16.mxu0 %v2928_v7 }
 0x288   : > { %2909 = vmatprep.subr.bf16.mxu1 %v2908_v50 }
 0x289   : > { %2501 = vmatmul.mubr.f32.gmra.mrb[16].mxu0 %v3400_v38 }
 0x28a   : > { %2503 = vmatprep.mubr.f32.mxu0 %v3414_v44  ;;  %2931 = vmatpush3.bf16.msra.mxu0 %v2928_v7 }
 0x28b   : > { %2911 = vmatpush3.bf16.msra.mxu1 %v2908_v50  ;;  %2933 = vmatprep.subr.bf16.mxu0 %v2932_v12 }
 0x28d   : > { %2504 = vmatmul.mubr.f32.gmra.mrb[18].mxu0 %v3412_v43 }
 0x28e   : > { %2506 = vmatprep.mubr.f32.mxu0 %v3426_v49  ;;  %2935 = vmatpush3.bf16.msra.mxu0 %v2932_v12 }
 0x28f   : > { %2937 = vmatprep.subr.bf16.mxu0 %v2936_v17 }
 0x291   : > { %2507 = vmatmul.mubr.f32.gmra.mrb[20].mxu0 %v3424_v48 }
 0x292   : > { %2509 = vmatprep.mubr.f32.mxu0 %v3432_v52  ;;  %2939 = vmatpush3.bf16.msra.mxu0 %v2936_v17 }
 0x295   : > { %2510 = vmatmul.mubr.f32.gmra.mrb[22].mxu0 %v3430_v51 }
 0x32c   : > { %v2434_v18 = vpop.f32.mrb[0].mxu0 }
 0x32d   : > { %v1032_v21 = vpop.f32.mrb[1].mxu0 }
 0x330   : > { %v2437_v22 = vpop.f32.mrb[2].mxu0 }
 0x331   : > { %v1042_v23 = vpop.f32.mrb[3].mxu0 }
 0x334   : > { %v2440_v2 = vpop.f32.mrb[4].mxu0 }
 0x335   : > { %v1052_v26 = vpop.f32.mrb[5].mxu0 }
 0x338   : > { %v2443_v27 = vpop.f32.mrb[6].mxu0 }
 0x339   : > { %v1062_v30 = vpop.f32.mrb[7].mxu0 }
 0x34c   : > { %v2490_v31 = vpop.f32.mrb[8].mxu0 }
 0x34d   : > { %v1297_v3 = vmul.f32 %v2490_v31, %v3400_v38  ;;  %v1193_v32 = vpop.f32.mrb[9].mxu0 }
 0x34e   : > { %v1296_v35 = vmul.f32 %v1193_v32, %v3402_v39 }
 0x350   : > { %v2493_v4 = vpop.f32.mrb[10].mxu0 }
 0x351   : > { %v1299_v5 = vmul.f32 %v2493_v4, %v3412_v43  ;;  %v1203_v36 = vpop.f32.mrb[11].mxu0  ;;  %v1853_v4 = vld [vmem:[%s3714_s12 + $0x18] sm:$0xff] }
 0x352   : > { %v1298_v8 = vmul.f32 %v1203_v36, %v3414_v44 }
 0x354   : > { %v2496_v9 = vpop.f32.mrb[12].mxu0 }
 0x355   : > { %v1301_v37 = vmul.f32 %v2496_v9, %v3424_v48  ;;  %v1213_v15 = vpop.f32.mrb[13].mxu0 }
 0x356   : > { %v1300_v16 = vmul.f32 %v1213_v15, %v3426_v49 }
 0x358   : > { %v2499_v40 = vpop.f32.mrb[14].mxu0 }
 0x359   : > { %v1303_v41 = vmul.f32 %v2499_v40, %v3430_v51  ;;  %v1223_v42 = vpop.f32.mrb[15].mxu0  ;;  %v1854_v40 = vld [vmem:[%s3714_s12 + $0x20] sm:$0xff] }
 0x35a   : > { %v1302_v38 = vmul.f32 %v1223_v42, %v3432_v52 }
 0x35c   : > { %v2502_v45 = vpop.f32.mrb[16].mxu0 }
 0x35d   : > { %v1273_v39 = vsub.f32 %v2434_v18, %v2502_v45  ;;  %v1233_v46 = vpop.f32.mrb[17].mxu0 }
 0x35e   : > { %v1272_v47 = vsub.f32 %v1032_v21, %v1233_v46  ;;  %v1729_v21 = vld [vmem:[%s3712_s10 + $0x78] sm:$0xff] }
 0x35f   : > { %v1289_v43 = vmul.f32 %v3351_v19, %v1273_v39 }
 0x360   : > { %v1288_v44 = vmul.f32 %v1272_v47, %v3354_v20  ;;  %v2505_v50 = vpop.f32.mrb[18].mxu0 }
 0x361   : > { %v1305_v53 = vadd.f32 %v1297_v3, %v1289_v43  ;;  %v1275_v48 = vsub.f32 %v2437_v22, %v2505_v50  ;;  %v1243_v54 = vpop.f32.mrb[19].mxu0  ;;  %v1857_v50 = vld [vmem:[%s3714_s12 + $0x38] sm:$0xff] }
 0x362   : > { %v1304_v55 = vadd.f32 %v1296_v35, %v1288_v44  ;;  %v1274_v49 = vsub.f32 %v1042_v23, %v1243_v54  ;;  %v1850_v23 = vld [vmem:[%s3714_s12] sm:$0xff]  ;;  %v1852_v35 = vld [vmem:[%s3714_s12 + $0x10] sm:$0xff] }
 0x363   : > { %v1291_v56 = vmul.f32 %v3364_v24, %v1275_v48  ;;  %v2948_v15 = vpack.c.bf16 %v1853_v4, %v1852_v35  ;;  %v1856_v44 = vld [vmem:[%s3714_s12 + $0x30] sm:$0xff] }
 0x364   : > { %3016 = vtanh.f32 %v1304_v55  ;;  %v1290_v51 = vmul.f32 %v1274_v49, %v3366_v25  ;;  %v2508_v52 = vpop.f32.mrb[20].mxu0 }
 0x365   : > { %3018 = vtanh.f32 %v1305_v53  ;;  %v1307_v57 = vadd.f32 %v1299_v5, %v1291_v56  ;;  %v1277_v58 = vsub.f32 %v2440_v2, %v2508_v52  ;;  %v1253_v59 = vpop.f32.mrb[21].mxu0  ;;  %v1851_v2 = vld [vmem:[%s3714_s12 + $0x8] sm:$0xff]  ;;  %v2956_v56 = vpack.c.bf16 %v1857_v50, %v1856_v44  ;;  %v1858_v52 = vld [vmem:[%s3714_s12 + $0x40] sm:$0xff] }
 0x366   : > { %v1306_v60 = vadd.f32 %v1298_v8, %v1290_v51  ;;  %v1276_v19 = vsub.f32 %v1052_v26, %v1253_v59  ;;  %v2944_v26 = vpack.c.bf16 %v1851_v2, %v1850_v23 }
 0x367   : > { %v1293_v20 = vmul.f32 %v3376_v28, %v1277_v58 }
 0x368   : > { %3020 = vtanh.f32 %v1306_v60  ;;  %v1292_v61 = vmul.f32 %v1276_v19, %v3378_v29  ;;  %v2511_v62 = vpop.f32.mrb[22].mxu0  ;;  %v1860_v19 = vld [vmem:[%s3714_s12 + $0x50] sm:$0xff] }
 0x369   : > { %3022 = vtanh.f32 %v1307_v57  ;;  %v1309_v63 = vadd.f32 %v1301_v37, %v1293_v20  ;;  %v1279_v0 = vsub.f32 %v2443_v27, %v2511_v62  ;;  %v1263_v24 = vpop.f32.mrb[23].mxu0  ;;  %v2112_v27 = vld [vmem:[%s3711_s9] ss:$0 sm:$0xff]  ;;  %v1859_v57 = vld [vmem:[%s3714_s12 + $0x48] sm:$0xff]  ;;  %v1861_v20 = vld [vmem:[%s3714_s12 + $0x58] sm:$0xff] }
 0x36a   : > { %v1308_v1 = vadd.f32 %v1300_v16, %v1292_v61  ;;  %v1278_v6 = vsub.f32 %v1062_v30, %v1263_v24  ;;  %v2960_v60 = vpack.c.bf16 %v1859_v57, %v1858_v52  ;;  %v2964_v61 = vpack.c.bf16 %v1861_v20, %v1860_v19  ;;  %v1862_v62 = vld [vmem:[%s3714_s12 + $0x60] sm:$0xff]  ;;  %v1864_v24 = vld [vmem:[%s3714_s12 + $0x70] sm:$0xff] }
 0x36b   : > { %v1295_v25 = vmul.f32 %v3388_v33, %v1279_v0  ;;  %v3039_v20 = vld [vmem:[%s3146_s22 + $0x30] sm:$0xff] }
 0x36c   : > { %3024 = vtanh.f32 %v1308_v1  ;;  %v1294_v7 = vmul.f32 %v1278_v6, %v3390_v34  ;;  %v1728_v34 = vld [vmem:[%s3712_s10 + $0x70] sm:$0xff]  ;;  %v1865_v1 = vld [vmem:[%s3714_s12 + $0x78] sm:$0xff] }
 0x36d   : > { %3026 = vtanh.f32 %v1309_v63  ;;  %v1311_v10 = vadd.f32 %v1303_v41, %v1295_v25  ;;  %v2940_v22 = vpack.c.bf16 %v1729_v21, %v1728_v34  ;;  %v1855_v41 = vld [vmem:[%s3714_s12 + $0x28] sm:$0xff]  ;;  %v2972_v6 = vpack.c.bf16 %v1865_v1, %v1864_v24  ;;  %v2113_v25 = vld [vmem:[%s3713_s11] ss:$0 sm:$0xff] }
 0x36e   : > { %v3017_v11 = vpop.eup %3016  ;;  %v1310_v12 = vadd.f32 %v1302_v38, %v1294_v7  ;;  %v2952_v47 = vpack.c.bf16 %v1855_v41, %v1854_v40  ;;  %v1863_v63 = vld [vmem:[%s3714_s12 + $0x68] sm:$0xff]  ;;  %v3033_v40 = vld [vmem:[%s3146_s22] sm:$0xff] }
 0x36f   : > { %v3019_v28 = vpop.eup %3018  ;;  %2632 = vmatprep.mubr.f32.mxu1 %v3017_v11  ;;  %2941 = vmatprep.subr.bf16.mxu0 %v2940_v22  ;;  %v2968_v0 = vpack.c.bf16 %v1863_v63, %v1862_v62 }
 0x370   : > { %3028 = vtanh.f32 %v1310_v12  ;;  %2633 = vmatmul.mubr.f32.vlgmr.msra.gmra.mrb[26].mxu1 %v3019_v28  ;;  %2943 = vmatpush3.bf16.msra.mxu0 %v2940_v22 }
 0x371   : > { %3030 = vtanh.f32 %v1311_v10  ;;  %2945 = vmatprep.subr.bf16.mxu0 %v2944_v26 }
 0x372   : > { %v3021_v29 = vpop.eup %3020 }
 0x373   : > { %v3023_v13 = vpop.eup %3022  ;;  %2635 = vmatprep.mubr.f32.mxu1 %v3021_v29 }
 0x374   : > { %2636 = vmatmul.mubr.f32.gmra.mrb[28].mxu1 %v3023_v13 }
 0x376   : > { %v3025_v14 = vpop.eup %3024 }
 0x377   : > { %v3027_v17 = vpop.eup %3026  ;;  %2638 = vmatprep.mubr.f32.mxu1 %v3025_v14 }
 0x378   : > { %2639 = vmatmul.mubr.f32.gmra.mrb[30].mxu1 %v3027_v17 }
 0x37a   : > { %v3029_v33 = vpop.eup %3028 }
 0x37b   : > { %v3031_v18 = vpop.eup %3030  ;;  %2641 = vmatprep.mubr.f32.mxu1 %v3029_v33 }
 0x37c   : > { %2642 = vmatmul.mubr.f32.gmra.mrb[32].mxu1 %v3031_v18 }
 0x443   : > { %v2634_v30 = vpop.f32.mrb[26].mxu1 }
 0x444   : > { %v1699_v31 = vadd.f32 %v2634_v30, %v2112_v27  ;;  %v1644_v3 = vpop.f32.mrb[27].mxu1 }
 0x445   : > { %v1698_v32 = vadd.f32 %v2112_v27, %v1644_v3 }
 0x446   : > { %v1707_v8 = vmax.f32 %v1699_v31, 0.0 }
 0x447   : > { %v1706_v5 = vmax.f32 %v1698_v32, 0.0  ;;  %v2637_v36 = vpop.f32.mrb[28].mxu1 }
 0x448   : > { %v1701_v9 = vadd.f32 %v2637_v36, %v2112_v27  ;;  %v1654_v37 = vpop.f32.mrb[29].mxu1 }
 0x449   : > { %v1700_v16 = vadd.f32 %v2112_v27, %v1654_v37  ;;  %2676 = vmatprep.mubr.f32.mxu0 %v1706_v5  ;;  %v2114_v5 = vld [vmem:[%s3715_s13] ss:$0 sm:$0xff] }
 0x44a   : > { %2677 = vmatmul.mubr.f32.vlgmr.msra.gmra.mrb[24].mxu0 %v1707_v8  ;;  %v1709_v45 = vmax.f32 %v1701_v9, 0.0 }
 0x44b   : > { %v1708_v42 = vmax.f32 %v1700_v16, 0.0  ;;  %v2640_v38 = vpop.f32.mrb[30].mxu1  ;;  %2947 = vmatpush3.bf16.msra.mxu0 %v2944_v26 }
 0x44c   : > { %v1703_v39 = vadd.f32 %v2640_v38, %v2112_v27  ;;  %v1664_v46 = vpop.f32.mrb[31].mxu1  ;;  %2949 = vmatprep.subr.bf16.mxu0 %v2948_v15 }
 0x44d   : > { %v1702_v43 = vadd.f32 %v2112_v27, %v1664_v46  ;;  %2679 = vmatprep.mubr.f32.mxu0 %v1708_v42  ;;  %v3034_v46 = vld [vmem:[%s3146_s22 + $0x18] sm:$0xff] }
 0x44e   : > { %2680 = vmatmul.mubr.f32.gmra.mrb[26].mxu0 %v1709_v45  ;;  %v1711_v54 = vmax.f32 %v1703_v39, 0.0 }
 0x44f   : > { %v1710_v53 = vmax.f32 %v1702_v43, 0.0  ;;  %v2643_v48 = vpop.f32.mrb[32].mxu1  ;;  %2951 = vmatpush3.bf16.msra.mxu0 %v2948_v15  ;;  %v3032_v15 = vld [vmem:[%s3146_s22 + $0x8] sm:$0xff]  ;;  %v3035_v43 = vld [vmem:[%s3146_s22 + $0x10] sm:$0xff] }
 0x450   : > { %v1705_v55 = vadd.f32 %v2643_v48, %v2112_v27  ;;  %v1674_v49 = vpop.f32.mrb[33].mxu1  ;;  %2953 = vmatprep.subr.bf16.mxu0 %v2952_v47 }
 0x451   : > { %v1704_v51 = vadd.f32 %v2112_v27, %v1674_v49  ;;  %2682 = vmatprep.mubr.f32.mxu0 %v1710_v53 }
 0x452   : > { %2683 = vmatmul.mubr.f32.gmra.mrb[28].mxu0 %v1711_v54  ;;  %v1713_v59 = vmax.f32 %v1705_v55, 0.0  ;;  %v3036_v55 = vld [vmem:[%s3146_s22 + $0x28] sm:$0xff] }
 0x453   : > { %v1712_v58 = vmax.f32 %v1704_v51, 0.0  ;;  %2955 = vmatpush3.bf16.msra.mxu0 %v2952_v47 }
 0x454   : > { %2957 = vmatprep.subr.bf16.mxu0 %v2956_v56 }
 0x455   : > { %2685 = vmatprep.mubr.f32.mxu0 %v1712_v58 }
 0x456   : > { %2686 = vmatmul.mubr.f32.gmra.mrb[30].mxu0 %v1713_v59 }
 0x457   : > { %2959 = vmatpush3.bf16.msra.mxu0 %v2956_v56  ;;  %v3037_v56 = vld [vmem:[%s3146_s22 + $0x20] sm:$0xff] }
 0x458   : > { %2961 = vmatprep.subr.bf16.mxu0 %v2960_v60 }
 0x45b   : > { %2963 = vmatpush3.bf16.msra.mxu0 %v2960_v60  ;;  %v3038_v60 = vld [vmem:[%s3146_s22 + $0x38] sm:$0xff] }
 0x45c   : > { %2965 = vmatprep.subr.bf16.mxu0 %v2964_v61 }
 0x45f   : > { %2967 = vmatpush3.bf16.msra.mxu0 %v2964_v61 }
 0x460   : > { %2969 = vmatprep.subr.bf16.mxu0 %v2968_v0 }
 0x463   : > { %2971 = vmatpush3.bf16.msra.mxu0 %v2968_v0 }
 0x464   : > { %2973 = vmatprep.subr.bf16.mxu0 %v2972_v6 }
 0x467   : > { %2975 = vmatpush3.bf16.msra.mxu0 %v2972_v6 }
 0x51d   : > { %v2678_v7 = vpop.f32.mrb[24].mxu0 }
 0x51e   : > { %v1809_v10 = vadd.f32 %v2678_v7, %v2113_v25  ;;  %v1803_v11 = vpop.f32.mrb[25].mxu0 }
 0x51f   : > { %v1804_v12 = vadd.f32 %v2113_v25, %v1803_v11 }
 0x520   : > { %v1843_v13 = vmax.f32 %v1809_v10, 0.0 }
 0x521   : > { %v1842_v28 = vmax.f32 %v1804_v12, 0.0  ;;  %v2681_v29 = vpop.f32.mrb[26].mxu0 }
 0x522   : > { %v1819_v14 = vadd.f32 %v2681_v29, %v2113_v25  ;;  %v1813_v17 = vpop.f32.mrb[27].mxu0 }
 0x523   : > { %v1814_v33 = vadd.f32 %v2113_v25, %v1813_v17  ;;  %2720 = vmatprep.mubr.f32.mxu0 %v1842_v28 }
 0x524   : > { %2721 = vmatmul.mubr.f32.vlgmr.msra.gmra.mrb[32].mxu0 %v1843_v13  ;;  %v1845_v21 = vmax.f32 %v1819_v14, 0.0 }
 0x525   : > { %v1844_v18 = vmax.f32 %v1814_v33, 0.0  ;;  %v2684_v34 = vpop.f32.mrb[28].mxu0 }
 0x526   : > { %v1829_v22 = vadd.f32 %v2684_v34, %v2113_v25  ;;  %v1823_v23 = vpop.f32.mrb[29].mxu0 }
 0x527   : > { %v1824_v2 = vadd.f32 %v2113_v25, %v1823_v23  ;;  %2723 = vmatprep.mubr.f32.mxu0 %v1844_v18 }
 0x528   : > { %2724 = vmatmul.mubr.f32.gmra.mrb[34].mxu0 %v1845_v21  ;;  %v1847_v30 = vmax.f32 %v1829_v22, 0.0 }
 0x529   : > { %v1846_v26 = vmax.f32 %v1824_v2, 0.0  ;;  %v2687_v27 = vpop.f32.mrb[30].mxu0 }
 0x52a   : > { %v1839_v31 = vadd.f32 %v2687_v27, %v2113_v25  ;;  %v1833_v3 = vpop.f32.mrb[31].mxu0 }
 0x52b   : > { %v1834_v32 = vadd.f32 %v2113_v25, %v1833_v3  ;;  %2726 = vmatprep.mubr.f32.mxu0 %v1846_v26 }
 0x52c   : > { %2727 = vmatmul.mubr.f32.gmra.mrb[36].mxu0 %v1847_v30  ;;  %v1849_v4 = vmax.f32 %v1839_v31, 0.0 }
 0x52d   : > { %v1848_v35 = vmax.f32 %v1834_v32, 0.0 }
 0x52f   : > { %2729 = vmatprep.mubr.f32.mxu0 %v1848_v35 }
 0x530   : > { %2730 = vmatmul.mubr.f32.gmra.mrb[38].mxu0 %v1849_v4 }
 0x5f7   : > { %v2722_v36 = vpop.f32.mrb[32].mxu0 }
 0x5f8   : > { %v1945_v8 = vadd.f32 %v2722_v36, %v2114_v5  ;;  %v1939_v9 = vpop.f32.mrb[33].mxu0 }
 0x5f9   : > { %v1940_v37 = vadd.f32 %v2114_v5, %v1939_v9 }
 0x5fa   : > { %v1979_v16 = vadd.f32 %v3032_v15, %v1945_v8 }
 0x5fb   : > { %v1978_v41 = vadd.f32 %v3033_v40, %v1940_v37  ;;  %v2725_v42 = vpop.f32.mrb[34].mxu0 }
 0x5fc   : > { %1987 = vst [vmem:[%s3681_s26 + $0x8] sm:$0xff] %v1979_v16  ;;  %v1955_v38 = vadd.f32 %v2725_v42, %v2114_v5  ;;  %v1949_v45 = vpop.f32.mrb[35].mxu0 }
 0x5fd   : > { %1986 = vst [vmem:[%s3681_s26] sm:$0xff] %v1978_v41  ;;  %v1950_v39 = vadd.f32 %v2114_v5, %v1949_v45 }
 0x5fe   : > { %v1981_v47 = vadd.f32 %v3034_v46, %v1955_v38 }
 0x5ff   : > { %v1980_v44 = vadd.f32 %v3035_v43, %v1950_v39  ;;  %v2728_v50 = vpop.f32.mrb[36].mxu0 }
 0x600   : > { %1989 = vst [vmem:[%s3681_s26 + $0x18] sm:$0xff] %v1981_v47  ;;  %v1965_v53 = vadd.f32 %v2728_v50, %v2114_v5  ;;  %v1959_v48 = vpop.f32.mrb[37].mxu0 }
 0x601   : > { %1988 = vst [vmem:[%s3681_s26 + $0x10] sm:$0xff] %v1980_v44  ;;  %v1960_v54 = vadd.f32 %v2114_v5, %v1959_v48 }
 0x602   : > { %v1983_v49 = vadd.f32 %v3036_v55, %v1965_v53 }
 0x603   : > { %v1982_v51 = vadd.f32 %v3037_v56, %v1960_v54  ;;  %v2731_v52 = vpop.f32.mrb[38].mxu0 }
 0x604   : > { %1991 = vst [vmem:[%s3681_s26 + $0x28] sm:$0xff] %v1983_v49  ;;  %v1975_v57 = vadd.f32 %v2731_v52, %v2114_v5  ;;  %v1969_v58 = vpop.f32.mrb[39].mxu0 }
 0x605   : > { %1990 = vst [vmem:[%s3681_s26 + $0x20] sm:$0xff] %v1982_v51  ;;  %v1970_v59 = vadd.f32 %v2114_v5, %v1969_v58 }
 0x606   : > { %v1985_v19 = vadd.f32 %v3038_v60, %v1975_v57 }
 0x607   : > { %v1984_v61 = vadd.f32 %v3039_v20, %v1970_v59 }
 0x608   : > { %1993 = vst [vmem:[%s3681_s26 + $0x38] sm:$0xff] %v1985_v19 }
 0x609   : > { %1992 = vst [vmem:[%s3681_s26 + $0x30] sm:$0xff] %v1984_v61 }
 0x60a PF: > { %s24_s29 = sadd.s32 1, %s3046_s29  }
 0x60b   : > { %p21_p4 = scmp.ge.s32.totalorder %s24_s29, 4  }
 0x60d   :  { %23 = sbr.rel (!%p21_p4) target bundleno = 1 (0x1), region = 112 }

</bundles_post_ra>
